<compile_context>
chip_gen: v5e
topology: v5e:2x2
jax: 0.10.0
libtpu: 0.0.40
codegen_flags: <defaults>
</compile_context>

<pallas_src>
import math

import numpy as np

import jax
import jax.numpy as jnp
from jax.experimental import pallas as pl
from jax.experimental.pallas import tpu as pltpu

TWO_PI = 2.0 * math.pi
INV_TWO_PI = 1.0 / TWO_PI

_FALLBACK_VMEM_BYTES = 64 * 1024 * 1024   # v7x-sized fallback (safe everywhere)

# SMEM scalar slot layout.
_S_THETA_STEP = 0      # theta_angular_frequency / samples_per_second
_S_INV_SAMPLES = 1     # 1 / samples_per_second
_S_COS_DELTA = 2       # cos(heading - preferred_heading) when both are scalars
_S_INPUT0 = 3          # slots 3..7: per-input scalar values (0 if streamed)


def _make_kernel(kinds, cos_folded, activity_dtype):
    """kinds: 5-tuple over (speed, heading, phase, pref, scaling), each one of
    'scalar' (SMEM) | 'full' | 'row' | 'col' (VMEM streams, in input order)."""
    n_streams = sum(1 for k in kinds if k != "scalar")

    def kernel(scal_ref, *refs):
        stream_refs = refs[:n_streams]
        phase_out_ref = refs[n_streams]
        act_out_ref = refs[n_streams + 1]

        theta_step = scal_ref[_S_THETA_STEP]
        inv_samples = scal_ref[_S_INV_SAMPLES]

        vals = []
        si = 0
        for idx, kind in enumerate(kinds):
            if kind == "scalar":
                vals.append(scal_ref[_S_INPUT0 + idx])
            else:
                vals.append(stream_refs[si][...])
                si += 1
        speed, heading, phase, pref, scaling = vals

        if cos_folded:
            # heading & preferred_heading are scalars: cos folded on the host
            # side -> no per-tile transcendental for the directional term.
            cos_delta = scal_ref[_S_COS_DELTA]
        else:
            # At least one of heading / preferred_heading is a streamed tile;
            # lazy broadcasting keeps the cos sized to the smaller tile.
            cos_delta = jnp.cos(heading - pref)

        phase_step = theta_step + (speed * scaling * inv_samples) * cos_delta

        # Floor-mod as multiply + floor (identical semantics, no f32 divide).
        x = phase + phase_step
        new_phase = x - TWO_PI * jnp.floor(x * INV_TWO_PI)
        new_phase = jnp.broadcast_to(new_phase, phase_out_ref.shape)

        phase_out_ref[...] = new_phase.astype(phase_out_ref.dtype)
        act_out_ref[...] = jnp.cos(new_phase).astype(act_out_ref.dtype)

    return kernel


def _plain_forward(speed, heading, phase, preferred_heading, scaling_parameter,
                   theta_angular_frequency, samples_per_second):
    """Pure-JAX path mirroring the PyTorch forward exactly."""
    angular_frequency = (theta_angular_frequency
                         + speed * scaling_parameter
                         * jnp.cos(heading - preferred_heading))
    new_phase = jnp.mod(phase + angular_frequency / samples_per_second, TWO_PI)
    return new_phase, jnp.cos(new_phase)


def _round_up(x, m):
    return ((x + m - 1) // m) * m


def _pick_col_block(n_cols, requested):
    """Lane-axis block: full extent if it fits, else prefer a 128-multiple that
    evenly divides n_cols (no masked vst edge tiles)."""
    requested = max(128, requested)
    if n_cols <= requested:
        return n_cols                      # full extent is always a legal block
    base = (requested // 128) * 128
    if n_cols % 128 == 0:
        for cand in range(base, max(128, base // 2) - 1, -128):
            if n_cols % cand == 0:
                return cand
    return base


def _pick_row_block(n_rows, requested, align):
    """Sublane-axis block: full extent if it fits, else prefer an aligned
    divisor of n_rows near the requested size."""
    requested = max(align, requested)
    if n_rows <= requested:
        return n_rows                      # full extent
    base = (requested // align) * align
    if n_rows % align == 0:
        for cand in range(base, max(align, base // 2) - 1, -align):
            if n_rows % cand == 0:
                return cand
    return base


def dendrite_forward(speed, heading, phase, preferred_heading, scaling_parameter,
                     *, samples_per_second, theta_frequency,
                     block_rows=None, block_cols=None,
                     activity_dtype=jnp.float32,
                     min_elements_for_pallas=64 * 1024,
                     donate_phase=False):
    """Pallas wrapper for Dendrite.forward.  Returns (phase, activity)."""
    theta_angular_frequency = theta_frequency * TWO_PI
    inv_samples = 1.0 / float(samples_per_second)
    theta_step = theta_angular_frequency * inv_samples

    args = [jnp.asarray(a, jnp.float32)
            for a in (speed, heading, phase, preferred_heading, scaling_parameter)]
    shape = jnp.broadcast_shapes(*(a.shape for a in args))
    total = 1
    for d in shape:
        total *= d

    is_scalar = [a.size == 1 for a in args]
    n_streamed = sum(1 for f in is_scalar if not f)

    # Tiny or fully-scalar problems: a fused XLA elementwise op beats the
    # pallas_call fixed overhead (launch + per-step DMA descriptors).
    if n_streamed == 0 or total < min_elements_for_pallas:
        new_phase, activity = _plain_forward(*args, theta_angular_frequency,
                                             samples_per_second)
        return (jnp.broadcast_to(new_phase, shape),
                jnp.broadcast_to(activity, shape).astype(activity_dtype))

    # ---- canonical 2-D working layout (dendrite axis -> 128-wide lanes) ----
    one_d = len(shape) == 1
    if one_d:
        n = shape[0]
        n_rows, n_cols = 1, n
        for c in (2048, 1024, 512, 256, 128):
            if n % c == 0 and n // c >= 2:
                n_rows, n_cols = n // c, c   # dense layout: >1 sublane per vreg
                break
    else:
        lead = 1
        for d in shape[:-1]:
            lead *= d
        n_rows, n_cols = lead, shape[-1]
    work_shape = (n_rows, n_cols)

    # ---- classify inputs: SMEM scalar / row stream / col stream / full ----
    kinds, streams = [], []
    for a, scalar_flag in zip(args, is_scalar):
        if scalar_flag:
            kinds.append("scalar")
            continue
        if one_d:
            kinds.append("full")
            streams.append(a.reshape(work_shape))
            continue
        ashape = (1,) * (len(shape) - a.ndim) + tuple(a.shape)
        lead = 1
        for d in ashape[:-1]:
            lead *= d
        if ashape == tuple(shape):
            kinds.append("full")
            streams.append(a.reshape(work_shape))
        elif ashape[-1] == shape[-1] and lead == 1:
            kinds.append("row")                       # per-dendrite only: (1, C)
            streams.append(a.reshape(1, n_cols))
        elif ashape[-1] == 1 and ashape[:-1] == tuple(shape[:-1]):
            kinds.append("col")                       # per-cell only: (R, 1)
            streams.append(a.reshape(n_rows, 1))
        else:
            # Partial broadcast over interior axes only: materialize (rare).
            kinds.append("full")
            streams.append(jnp.broadcast_to(a, shape).reshape(work_shape))
    kinds = tuple(kinds)

    cos_folded = is_scalar[1] and is_scalar[3]

    # ---- SMEM scalars (values, not compile-time constants -> no recompiles
    # when speed/heading/samples change between calls) ----
    scal_vals = [jnp.float32(theta_step), jnp.float32(inv_samples)]
    if cos_folded:
        scal_vals.append(jnp.cos(args[1] - args[3]).reshape(()).astype(jnp.float32))
    else:
        scal_vals.append(jnp.float32(0.0))
    for a, scalar_flag in zip(args, is_scalar):
        scal_vals.append(a.reshape(()).astype(jnp.float32) if scalar_flag
                         else jnp.float32(0.0))
    scalars = jnp.stack(scal_vals)          # (8,) f32

    # ---- chip-aware tile sizing & VMEM budget ----
    act_bytes = np.dtype(activity_dtype).itemsize
    row_align = 16 if act_bytes < 4 else 8   # bf16 activity packs (16,128)

    try:
        vmem_capacity = int(pltpu.get_tpu_info().vmem_capacity_bytes)
    except Exception:
        vmem_capacity = _FALLBACK_VMEM_BYTES
    usable_vmem = (vmem_capacity * 3) // 4   # headroom for Mosaic scratch

    n_full = sum(1 for k in kinds if k == "full")
    # Double-buffered bytes per tile element (full streams + both outputs).
    per_elem = 2 * (4 * n_full + 4 + act_bytes)

    if block_cols is None:
        block_cols = 2048 if n_full <= 2 else 1024
    if block_rows is None:
        block_rows = 1024 if n_full <= 2 else 512

    max_area = max(row_align * 128, (usable_vmem - (2 << 20)) // per_elem)

    bc = _pick_col_block(n_cols, min(block_cols, max(128, max_area // row_align)))
    rows_budget = max(row_align, (max_area // bc) // row_align * row_align)
    br = _pick_row_block(n_rows, min(block_rows, rows_budget), row_align)

    def _footprint(br_, bc_):
        f = per_elem * br_ * bc_
        for k in kinds:
            if k == "row":
                f += 2 * 4 * bc_
            elif k == "col":
                f += 2 * 4 * br_
        return f

    # If a caller-requested block overshoots the budget, shrink the tile rather
    # than clamping the VMEM limit below the real footprint.
    while _footprint(br, bc) > usable_vmem and br > row_align:
        br = max(row_align, (br // 2) // row_align * row_align)
    while _footprint(br, bc) > usable_vmem and bc > 128:
        bc = max(128, (bc // 2) // 128 * 128)

    # v7x has 2 TensorCores: guarantee >= 2 programs along a 'parallel' axis.
    # Harmless (one extra cheap grid step) on single-TC v5e / v6e.
    if pl.cdiv(n_rows, br) * pl.cdiv(n_cols, bc) < 2:
        if n_rows > row_align:
            br = min(br, _round_up(pl.cdiv(n_rows, 2), row_align))
        elif n_cols > 128:
            bc = min(bc, _round_up(pl.cdiv(n_cols, 2), 128))

    grid = (pl.cdiv(n_rows, br), pl.cdiv(n_cols, bc))

    def _stream_spec(kind):
        if kind == "full":
            return pl.BlockSpec((br, bc), lambda i, j: (i, j))
        if kind == "row":
            return pl.BlockSpec((1, bc), lambda i, j: (0, j))
        return pl.BlockSpec((br, 1), lambda i, j: (i, 0))      # 'col'

    in_specs = [pl.BlockSpec(memory_space=pltpu.MemorySpace.SMEM)]
    in_specs += [_stream_spec(k) for k in kinds if k != "scalar"]
    out_tile = pl.BlockSpec((br, bc), lambda i, j: (i, j))

    io_aliases = {}
    if donate_phase and kinds[2] == "full":
        phase_stream_pos = sum(1 for k in kinds[:2] if k != "scalar")
        io_aliases = {1 + phase_stream_pos: 0}      # phase in -> phase out

    vmem_limit = min(int(vmem_capacity * 0.9),
                     max(32 * 1024 * 1024, _footprint(br, bc) + (4 << 20)))

    kernel = _make_kernel(kinds, cos_folded, activity_dtype)
    out_shapes = (jax.ShapeDtypeStruct(work_shape, jnp.float32),
                  jax.ShapeDtypeStruct(work_shape, activity_dtype))

    new_phase, activity = pl.pallas_call(
        kernel,
        out_shape=out_shapes,
        grid=grid,
        in_specs=in_specs,
        out_specs=(out_tile, out_tile),
        input_output_aliases=io_aliases,
        compiler_params=pltpu.CompilerParams(
            dimension_semantics=("parallel", "parallel"),
            vmem_limit_bytes=int(vmem_limit)),
    )(scalars, *streams)

    return new_phase.reshape(shape), activity.reshape(shape)


if __name__ == "__main__":
    # 200 grid cells x 512 dendrites (small, but above the Pallas crossover).
    N_CELLS, N_DENDRITES = 200, 512
    SAMPLES_PER_SECOND = 1000.0
    THETA_FREQUENCY = 8.0              # Hz (MEC layer II theta)
    SCALING_PARAMETER = 0.05 * TWO_PI  # radians per cm

    key = jax.random.PRNGKey(0)
    k_speed, k_heading, k_phase, k_pref = jax.random.split(key, 4)

    speed = jax.random.uniform(k_speed, (), jnp.float32, 0.0, 30.0)        # cm/s
    heading = jax.random.uniform(k_heading, (), jnp.float32, 0.0, TWO_PI)  # rad
    phase = jax.random.uniform(k_phase, (N_CELLS, N_DENDRITES),
                               jnp.float32, 0.0, TWO_PI)
    preferred_heading = jax.random.uniform(k_pref, (1, N_DENDRITES),
                                           jnp.float32, 0.0, TWO_PI)
    scaling_parameter = jnp.float32(SCALING_PARAMETER)

    def check(got_phase, got_act, want_phase, want_act):
        # Phase is an angle: compare on the circle so a +/- 2*pi wrap right at
        # the boundary (pure float rounding) cannot cause a false failure.
        diff = jnp.abs(got_phase - want_phase)
        circ = jnp.minimum(diff, TWO_PI - diff)
        assert bool(jnp.all(circ < 1e-4)), float(jnp.max(circ))
        assert jnp.allclose(got_act, want_act, atol=1e-5, rtol=1e-5)

    # Case 1: per-dendrite preferred_heading streams unbroadcast as a (1, N)
    # row BlockSpec; speed / heading / scaling ride in SMEM; explicit small
    # blocks exercise a multi-step grid.
    new_phase, activity = dendrite_forward(
        speed, heading, phase, preferred_heading, scaling_parameter,
        samples_per_second=SAMPLES_PER_SECOND,
        theta_frequency=THETA_FREQUENCY,
        block_rows=64, block_cols=256)
    jax.block_until_ready((new_phase, activity))

    ref_phase, ref_activity = _plain_forward(
        speed, heading, phase, preferred_heading, scaling_parameter,
        THETA_FREQUENCY * TWO_PI, SAMPLES_PER_SECOND)
    assert new_phase.shape == (N_CELLS, N_DENDRITES)
    assert activity.shape == (N_CELLS, N_DENDRITES)
    check(new_phase, activity, ref_phase, ref_activity)

    # Case 2: all directional inputs are scalars -> the directional cos folds
    # to one host-side scalar; auto chip-aware tiling with the >=2-program
    # split and a ragged (padded) edge tile.
    pref_scalar = jnp.float32(1.25)
    new_phase2, activity2 = dendrite_forward(
        speed, heading, phase, pref_scalar, scaling_parameter,
        samples_per_second=SAMPLES_PER_SECOND,
        theta_frequency=THETA_FREQUENCY)
    jax.block_until_ready((new_phase2, activity2))

    ref_phase2, ref_activity2 = _plain_forward(
        speed, heading, phase, pref_scalar, scaling_parameter,
        THETA_FREQUENCY * TWO_PI, SAMPLES_PER_SECOND)
    check(new_phase2, activity2, ref_phase2, ref_activity2)

    print("KERNEL_OK")
</pallas_src>

<mosaic_0001>
module attributes {stable_mosaic.version = 11 : i64} {
  func.func @kernel(%arg0: i32, %arg1: i32, %arg2: memref<8xf32, #tpu.memory_space<smem>>, %arg3: memref<40x256xf32, #tpu.memory_space<vmem>>, %arg4: memref<1x256xf32, #tpu.memory_space<vmem>>, %arg5: memref<40x256xf32, #tpu.memory_space<vmem>>, %arg6: memref<40x256xf32, #tpu.memory_space<vmem>>) attributes {dimension_semantics = [#tpu.dimension_semantics<parallel>, #tpu.dimension_semantics<parallel>], iteration_bounds = array<i64: 5, 2>, scalar_prefetch = 0 : i64, scratch_operands = 0 : i64, tpu.core_type = #tpu.core_type<tc>, window_params = [{transform_indices = @transform_0, window_bounds = array<i64: 8>}, {transform_indices = @transform_1, window_bounds = array<i64: 40, 256>}, {transform_indices = @transform_2, window_bounds = array<i64: 1, 256>}, {transform_indices = @transform_3, window_bounds = array<i64: 40, 256>}, {transform_indices = @transform_4, window_bounds = array<i64: 40, 256>}]} {
    %c0 = arith.constant 0 : index
    %0 = memref.load %arg2[%c0] : memref<8xf32, #tpu.memory_space<smem>>
    %c1 = arith.constant 1 : index
    %1 = memref.load %arg2[%c1] : memref<8xf32, #tpu.memory_space<smem>>
    %c3 = arith.constant 3 : index
    %2 = memref.load %arg2[%c3] : memref<8xf32, #tpu.memory_space<smem>>
    %c4 = arith.constant 4 : index
    %3 = memref.load %arg2[%c4] : memref<8xf32, #tpu.memory_space<smem>>
    %c0_0 = arith.constant 0 : index
    %c0_1 = arith.constant 0 : index
    %4 = vector.load %arg3[%c0_0, %c0_1] : memref<40x256xf32, #tpu.memory_space<vmem>>, vector<40x256xf32>
    %c0_2 = arith.constant 0 : index
    %c0_3 = arith.constant 0 : index
    %5 = vector.load %arg4[%c0_2, %c0_3] : memref<1x256xf32, #tpu.memory_space<vmem>>, vector<1x256xf32>
    %c7 = arith.constant 7 : index
    %6 = memref.load %arg2[%c7] : memref<8xf32, #tpu.memory_space<smem>>
    %7 = vector.broadcast %3 : f32 to vector<1x256xf32>
    %8 = arith.subf %7, %5 : vector<1x256xf32>
    %9 = math.cos %8 : vector<1x256xf32>
    %10 = arith.mulf %2, %6 : f32
    %11 = arith.mulf %10, %1 : f32
    %12 = vector.broadcast %11 : f32 to vector<1x256xf32>
    %13 = arith.mulf %12, %9 : vector<1x256xf32>
    %14 = vector.broadcast %0 : f32 to vector<1x256xf32>
    %15 = arith.addf %14, %13 : vector<1x256xf32>
    %16 = vector.broadcast %15 : vector<1x256xf32> to vector<40x256xf32>
    %17 = arith.addf %4, %16 : vector<40x256xf32>
    %cst = arith.constant 0.159154937 : f32
    %18 = vector.broadcast %cst : f32 to vector<40x256xf32>
    %19 = arith.mulf %17, %18 : vector<40x256xf32>
    %20 = math.floor %19 : vector<40x256xf32>
    %cst_4 = arith.constant 6.28318548 : f32
    %21 = vector.broadcast %cst_4 : f32 to vector<40x256xf32>
    %22 = arith.mulf %21, %20 : vector<40x256xf32>
    %23 = arith.subf %17, %22 : vector<40x256xf32>
    %c0_5 = arith.constant 0 : index
    %c0_6 = arith.constant 0 : index
    %24 = vector.load %arg5[%c0_5, %c0_6] : memref<40x256xf32, #tpu.memory_space<vmem>>, vector<40x256xf32>
    tpu.vector_store %arg5[%c0_5, %c0_6], %23 {strides = array<i32>} : memref<40x256xf32, #tpu.memory_space<vmem>>, vector<40x256xf32>,
    %25 = math.cos %23 : vector<40x256xf32>
    %c0_7 = arith.constant 0 : index
    %c0_8 = arith.constant 0 : index
    %26 = vector.load %arg6[%c0_7, %c0_8] : memref<40x256xf32, #tpu.memory_space<vmem>>, vector<40x256xf32>
    tpu.vector_store %arg6[%c0_7, %c0_8], %25 {strides = array<i32>} : memref<40x256xf32, #tpu.memory_space<vmem>>, vector<40x256xf32>,
    return
  }
  func.func @transform_0(%arg0: i32, %arg1: i32) -> i32 {
    %c0_i32 = arith.constant 0 : i32
    %c0_i32_0 = arith.constant 0 : i32
    return %c0_i32 : i32
  }
  func.func @transform_1(%arg0: i32, %arg1: i32) -> (i32, i32) {
    %c0_i32 = arith.constant 0 : i32
    return %arg0, %arg1 : i32, i32
  }
  func.func @transform_2(%arg0: i32, %arg1: i32) -> (i32, i32) {
    %c0_i32 = arith.constant 0 : i32
    %c0_i32_0 = arith.constant 0 : i32
    return %c0_i32, %arg1 : i32, i32
  }
  func.func @transform_3(%arg0: i32, %arg1: i32) -> (i32, i32) {
    %c0_i32 = arith.constant 0 : i32
    return %arg0, %arg1 : i32, i32
  }
  func.func @transform_4(%arg0: i32, %arg1: i32) -> (i32, i32) {
    %c0_i32 = arith.constant 0 : i32
    return %arg0, %arg1 : i32, i32
  }
}

</mosaic_0001>

<bundles_post_ra>
// kernel: tpu_custom_call.1
= control target key start
LH: loop header
LB: loop body
LE: loop exit
PB: predicated region body
PF: predicated region fallthrough
CT: control target
= control target key end

     0   :  { %s4302_s0 = inlined_call_operand.hbm [shape: f32[8], index: 0, kind: input, shape index: {}]   ;;  %s4303_s1 = inlined_call_operand.hbm [shape: f32[200,512], index: 1, kind: input, shape index: {}]   ;;  %s4304_s2 = inlined_call_operand.hbm [shape: f32[1,512], index: 2, kind: input, shape index: {}]   ;;  %s4305_s3 = inlined_call_operand.hbm [shape: f32[200,512], index: 3, kind: output, shape index: {0}]   ;;  %s4306_s4 = inlined_call_operand.hbm [shape: f32[200,512], index: 4, kind: output, shape index: {1}]  }
   0x1   :  { %4314 = sst [smem:[#allocation20_spill]] %s4302_s0 }
   0x2   :  { %4315 = sst [smem:[#allocation21_spill]] %s4305_s3 }
   0x3   :  { %4316 = sst [smem:[#allocation22_spill]] %s4306_s4 }
   0x4   :  { %10 = vsyncpa [#allocation5], 0 }
   0x5   :  { %11 = vsyncpa [#allocation3], 0 }
   0x6   :  { %13 = vsyncpa [#allocation3 + $0x1], 0 }
   0x7   :  { %14 = vsyncpa [#allocation8], 0 }
   0x8   :  { %16 = vsyncpa [#allocation8 + $0x1], 0 }
   0x9   :  { %17 = vsyncpa [#allocation4], 0 }
   0xa   :  { %19 = vsyncpa [#allocation4 + $0x1], 0 }
   0xb   :  { %20 = vsyncpa [#allocation11], 0 }
   0xc   :  { %22 = vsyncpa [#allocation11 + $0x1], 0  ;;  %s2792_s15 = smov 0   ;;  %s2794_s16 = smov 0  }
   0xd   :  { %s2796_s17 = smov 0   ;;  %s2798_s18 = smov 0  }
   0xe   :  { %s2800_s19 = smov 0   ;;  %s2802_s20 = smov 0  }
   0xf   :  { %s2804_s21 = smov 0   ;;  %s2806_s22 = smov 0  }
  0x10   :  { %s2808_s23 = smov 0   ;;  %s2810_s24 = smov 0  }
  0x11   :  { %s2812_s25 = smov 0  }
  0x12 LB: > { %4317 = sst [smem:[#allocation17_spill]] %s2723_s18  ;;  %s2308_s26 = sadd.s32 4294967295, %s2751_s25   ;;  %s2751_s25 = sphi %s2812_s25, %s28_s25   ;;  %s2747_s24 = sphi %s2810_s24, %s4362_s24   ;;  %s2743_s23 = sphi %s2808_s23, %s4361_s23   ;;  %s2739_s22 = sphi %s2806_s22, %s4360_s22   ;;  %s2735_s21 = sphi %s2804_s21, %s4359_s21   ;;  %s2731_s20 = sphi %s2802_s20, %s4358_s20   ;;  %s2727_s19 = sphi %s2800_s19, %s4357_s19   ;;  %s2723_s18 = sphi %s2798_s18, %s4356_s18   ;;  %s2719_s17 = sphi %s2796_s17, %s4355_s17   ;;  %s2715_s16 = sphi %s2794_s16, %s4354_s16   ;;  %s2711_s15 = sphi %s2792_s15, %s4353_s15  }
  0x13   : > { %s2309_s27 = sadd.s32 4294967294, %s2751_s25   ;;  %p77_p0 = scmp.ne.s32.totalorder %s2731_s20, %s2727_s19 }
  0x14   : > { %p78_p1 = scmp.eq.s32.totalorder %s2751_s25, 0  ;;  %p83_p2 = scmp.ne.s32.totalorder %s2727_s19, %s2723_s18 }
  0x15   : > { %p2855_p3 = scmp.eq.s32.totalorder %s2308_s26, 0  ;;  %p135_p4 = scmp.eq.s32.totalorder %s2308_s26, 9 }
  0x16   : > { %p79_p5 = por %p78_p1, %p77_p0  ;;  %p141_p6 = scmp.eq.s32.totalorder %s2309_s27, 9 }
  0x17   : > { %p2863_p7 = por %p2855_p3, %p83_p2  ;;  %p2867_p8 = por %p135_p4, %p77_p0 }
  0x18   : > { %p2871_p9 = por %p141_p6, %p83_p2  ;;  %p2310_p10 = scmp.ge.s32.totalorder %s2751_s25, 1 }
  0x19   : > { %s4320_s5 = scalar_select %p2867_p8, 1, 0 }
  0x1a   : > { %s4322_s6 = scalar_select %p2871_p9, 1, 0 }
  0x1b   : > { %4321 = sst [smem:[#allocation18_spill]] %s4320_s5  ;;  %p176_p11 = scmp.lt.s32.totalorder %s2751_s25, 11 }
  0x1c   : > { %4323 = sst [smem:[#allocation19_spill]] %s4322_s6  ;;  %p2402_p13 = scmp.lt.s32.totalorder %s2751_s25, 10 }
  0x1d   : > { %s4324_s0 = sld [smem:[#allocation20_spill]]  ;;  %p2880_p12 = pnand %p2310_p10, %p176_p11 }
  0x1e   : > { %p2889_p2 = pnand %p2402_p13, %p79_p5  ;;  %s37_s12 = sadd.s32 1, %s2743_s23 }
  0x1f   : > { %p2383_p0 = pneg %p2880_p12  ;;  %s2753_s13 = smov [#allocation2]  }
  0x20   : > { %p38_p6 = scmp.ge.s32.totalorder %s37_s12, 2  ;;  %s40_s14 = sadd.s32 1, %s2747_s24 }
  0x21   : > { %p2384_p4 = pnand %p2383_p0, %p2855_p3  ;;  %s199_s26 = sand.u32 1, %s2731_s20  }
  0x22   : > { %s2313_s27 = sshll.u32 %s2743_s23, 1  ;;  %s4364_s12 = smov (%p38_p6, %s37_s12), 0 }
  0x23   : > { %s188_s9 = sshll.u32 %s4324_s0, 4  ;;  %s4366_s14 = smov (!%p38_p6, %s40_s14), %s2747_s24  ;;  %s189_s9 = int_to_ptr.hbm [resolvable:$true] %s188_s9 }
  0x24   : > { %2386 = dma.hbm_to_smem (!%p2384_p4), %s189_s9, 16, %s2753_s13, [#allocation5]  }
  0x25   : > { %s2369_s7 = smul.u32 80, %s199_s26  ;;  %s200_s3 = scalar_lea.sflag [#allocation3], %s199_s26 }
  0x26   : > { %s2366_s8 = smul.u32 20, %s2747_s24  ;;  %p42_p5 = scmp.ge.s32.totalorder %s4366_s14, 5 }
  0x27   : > { %s203_s0 = scalar_lea.vmem [#allocation6], %s2369_s7  ;;  %s2755_s7 = smov 256  }
  0x28   : > { %s209_s28 = sadd.s32 %s2366_s8, %s2313_s27  ;;  %s214_s6 = sshll.u32 %s203_s0, 4  ;;  %s215_s6 = int_to_ptr.vmem [resolvable:$true] %s214_s6 }
  0x29   : > { %s2315_s18 = sshll.u32 %s209_s28, 3  ;;  %s2754_s8 = smov 512  }
  0x2a   : > { %s211_s4 = scalar_lea.hbm %s4303_s1, %s2315_s18  ;;  %s2756_s0 = smov 16  }
  0x2b   : > { %s212_s5 = sshll.u32 %s211_s4, 4  ;;  %s66_s28 = ssub.s32 %s2743_s23, %s4364_s12  ;;  %s213_s5 = int_to_ptr.hbm [resolvable:$true] %s212_s5 }
  0x2c   : > { %2390 = dma.hbm_to_vmem [thread:$0]  (!%p2889_p2), %s213_s5, 1280, %s215_s6, %s200_s3, %s2754_s8, %s2755_s7, %s2756_s0  }
  0x2d   : > { %p94_p10 = scmp.eq.s32.totalorder %s66_s28, 0  ;;  %s96_s18 = sadd.s32 1, %s2719_s17 }
  0x2e   : > { %s4368_s14 = smov (%p42_p5, %s4366_s14), 0  ;;  %p103_p11 = scmp.ne.s32.totalorder %s2719_s17, %s2715_s16 }
  0x2f   : > { %s2916_s4 = scalar_select %p94_p10, %s2719_s17, %s96_s18  }
  0x30   : > { %s65_s26 = ssub.s32 %s2747_s24, %s4368_s14  ;;  %p109_p0 = scmp.ne.s32.totalorder %s2715_s16, %s2711_s15 }
  0x31   : > { %s67_s9 = sor.u32 %s66_s28, %s65_s26  ;;  %s224_s3 = sand.u32 1, %s2719_s17  }
  0x32   : > { %p68_p4 = scmp.eq.s32.totalorder %s67_s9, 0  ;;  %p2926_p6 = por %p109_p0, %p2855_p3 }
  0x33   : > { %s4328_s5 = sadd.s32 1, %s2731_s20  ;;  %p105_p2 = por %p103_p11, %p78_p1 }
  0x34   : > { %s2934_s6 = scalar_select %p68_p4, %s2731_s20, %s4328_s5  }
  0x35   : > { %s2316_s13 = sshll.u32 %s224_s3, 1  ;;  %s232_s0 = scalar_lea.hbm %s4304_s2, %s2313_s27 }
  0x36   : > { %s234_s28 = sshll.u32 %s232_s0, 4  ;;  %s228_s15 = scalar_lea.vmem [#allocation7], %s2316_s13  ;;  %s235_s28 = int_to_ptr.hbm [resolvable:$true] %s234_s28 }
  0x37   : > { %s236_s18 = sshll.u32 %s228_s15, 4  ;;  %p2391_p5 = pnand %p2402_p13, %p105_p2  ;;  %s237_s18 = int_to_ptr.vmem [resolvable:$true] %s236_s18 }
  0x38   : > { %s225_s26 = scalar_lea.sflag [#allocation8], %s224_s3  ;;  %245 = sbr.rel (%p2880_p12) target bundleno = 613 (0x265), region = 32 }
  0x39   : > { %2393 = dma.hbm_to_vmem [thread:$0]  (!%p2391_p5), %s235_s28, 32, %s237_s18, %s225_s26  }
  0x3d   : > { %2690 = dma.done.wait (%p2855_p3), [#allocation5], 16  }
  0x3e   : > { %2692 = vsyncadd (%p2855_p3), [#allocation5], 4294967280  ;;  %s2952_s27 = sand.u32 1, %s2727_s19  }
  0x3f   : > { %s2955_s9 = smul.u32 80, %s2952_s27  ;;  %s253_s3 = scalar_lea.sflag [#allocation3], %s2952_s27 }
  0x41   : > { %s2959_s5 = scalar_lea.vmem [#allocation6], %s2955_s9 }
  0x42   : > { %2694 = dma.done.wait (%p2863_p7), %s253_s3, 1280  }
  0x43   : > { %2696 = vsyncadd (%p2863_p7), %s253_s3, 4294966016  ;;  %s262_s29 = sand.u32 1, %s2715_s16  }
  0x44   : > { %s2320_s10 = sshll.u32 %s262_s29, 1  ;;  %s263_s13 = scalar_lea.sflag [#allocation8], %s262_s29 }
  0x45   : > { %s266_s8 = scalar_lea.vmem [#allocation7], %s2320_s10 }
  0x46   : > { %2698 = dma.done.wait (%p2926_p6), %s263_s13, 32  }
  0x47   : > { %2700 = vsyncadd (%p2926_p6), %s263_s13, 4294967264 }
  0x48   : > { %272 = sfence }
  0x49   : > { %s2323_s7 = sld [smem:[#allocation2 + $0x4]]  ;;  %v324_v0 = vld [vmem:[%s266_s8] sm:$0x3]  ;;  %v2757_v14 = vmov 683565275   ;;  %s3059_s26 = scalar_lea.vmem [#allocation9], %s2955_s9 }
  0x4a   : > { %v2758_v16 = vmov 2475754826   ;;  %v2759_v18 = vmov 2131351028   ;;  %v2760_v20 = vmov 2102212464  }
  0x4b   : > { %v2761_v22 = vmov 920167782   ;;  %v2762_v28 = vmov 1326507024   ;;  %s2322_s30 = sld [smem:[#allocation2 + $0x3]]  ;;  %s3381_s3 = scalar_lea.vmem [#allocation10], %s2955_s9 }
  0x4c   : > { %s2324_s11 = sld [smem:[#allocation2 + $0x7]]  ;;  %s2367_s9 = smul.u32 20, %s2739_s22 }
  0x4d   : > { %s2321_s0 = sld [smem:[#allocation2 + $0x1]] }
  0x4e   : > { %s310_s15 = sld [smem:[#allocation2]] }
  0x4f   : > { %v326_v1 = vstv %s2323_s7  ;;  %s4341_s13 = sld [smem:[#allocation21_spill]]  ;;  %s2124_s7 = sshll.u32 %s3059_s26, 4  ;;  %s4030_s7 = int_to_ptr.vmem [resolvable:$true] %s2124_s7 }
  0x50   : > { %v2970_v2 = vsub.f32 %v326_v1, %v324_v0 }
  0x52   : > { %v331_v3 = vand.u32 2139095040, %v2970_v2  ;;  %v328_v5 = vand.u32 2147483647, %v2970_v2  ;;  %vm330_vm12 = vcmp.lt.s32.totalorder %v2970_v2, 0  ;;  %s482_s28 = smul.f32 %s2324_s11, %s2322_s30 }
  0x54   : > { %v332_v4 = vshrl.u32 %v331_v3, 23  ;;  %v335_v8 = vand.u32 8388607, %v328_v5  ;;  %v2763_v3 = vmov 0   ;;  %vm3029_vm13 = vcmp.le.f32.partialorder %v328_v5, 0.7853982  ;;  %s483_s18 = smul.f32 %s2321_s0, %s482_s28 }
  0x55   : > { %s2104_s0 = scalar_lea.sflag [#allocation4], %s2952_s27 }
  0x56   : > { %v2325_v6 = vadd.s32 4294967169, %v332_v4  ;;  %v336_v11 = vor.u32 8388608, %v335_v8 }
  0x58   : > { %v338_v7 = vadd.s32 1, %v2325_v6  ;;  %v2989_v30 = vshll.u32 %v336_v11, 8 }
  0x5a   : > { %vm339_vm0 = vcmp.gt.s32.totalorder %v338_v7, 0  ;;  %v377_v42 = vand.u32 65535, %v2989_v30  ;;  %v378_v43 = vshrl.u32 %v2989_v30, 16 }
  0x5b   : > { %v340_v9 = vsel %vm339_vm0, %v338_v7, 0 }
  0x5c   : > { %v342_v10 = vand.u32 31, %v340_v9  ;;  %v2976_v12 = vshrl.u32 %v340_v9, 5 }
  0x5e   : > { %v343_v13 = vsub.s32 32, %v342_v10  ;;  %v345_v15 = vshll.u32 %v2757_v14, %v342_v10  ;;  %v348_v17 = vshll.u32 %v2758_v16, %v342_v10  ;;  %v351_v19 = vshll.u32 %v2759_v18, %v342_v10 }
  0x5f   : > { %v354_v21 = vshll.u32 %v2760_v20, %v342_v10  ;;  %v357_v23 = vshll.u32 %v2761_v22, %v342_v10  ;;  %vm360_vm1 = vcmp.lt.s32.totalorder %v2976_v12, 1  ;;  %vm363_vm2 = vcmp.lt.s32.totalorder %v2976_v12, 4 }
  0x60   : > { %v346_v24 = vshrl.u32 %v2758_v16, %v343_v13  ;;  %v349_v25 = vshrl.u32 %v2759_v18, %v343_v13  ;;  %v352_v26 = vshrl.u32 %v2760_v20, %v343_v13  ;;  %v355_v27 = vshrl.u32 %v2761_v22, %v343_v13 }
  0x61   : > { %v358_v29 = vshrl.u32 %v2762_v28, %v343_v13  ;;  %vm362_vm3 = vcmp.lt.s32.totalorder %v2976_v12, 3  ;;  %vm361_vm4 = vcmp.lt.s32.totalorder %v2976_v12, 2  ;;  %v344_v50 = vshrl.u32 %v2757_v14, %v343_v13 }
  0x62   : > { %v347_v31 = vor.u32 %v346_v24, %v345_v15  ;;  %v350_v32 = vor.u32 %v349_v25, %v348_v17  ;;  %v353_v33 = vor.u32 %v352_v26, %v351_v19  ;;  %v356_v34 = vor.u32 %v355_v27, %v354_v21 }
  0x63   : > { %v359_v35 = vor.u32 %v358_v29, %v357_v23 }
  0x64   : > { %v368_v36 = vsel %vm360_vm1, %v347_v31, %v350_v32  ;;  %v372_v37 = vsel %vm360_vm1, %v350_v32, %v353_v33  ;;  %v369_v38 = vsel %vm363_vm2, %v356_v34, 920167782  ;;  %v364_v63 = vsel %vm360_vm1, %v344_v50, %v347_v31 }
  0x65   : > { %v373_v39 = vsel %vm363_vm2, %v359_v35, 1326507024  ;;  %v370_v40 = vsel %vm362_vm3, %v353_v33, %v369_v38  ;;  %v365_v1 = vsel %vm363_vm2, %v353_v33, 2102212464  ;;  %vm471_vm1 = vweird.f32 %v2970_v2 }
  0x66   : > { %v374_v41 = vsel %vm362_vm3, %v356_v34, %v373_v39  ;;  %v371_v44 = vsel %vm361_vm4, %v368_v36, %v370_v40  ;;  %v366_v15 = vsel %vm362_vm3, %v350_v32, %v365_v1 }
  0x67   : > { %v375_v45 = vsel %vm361_vm4, %v372_v37, %v374_v41  ;;  %v401_v48 = vand.u32 65535, %v371_v44  ;;  %v402_v49 = vshrl.u32 %v371_v44, 16  ;;  %v367_v27 = vsel %vm361_vm4, %v364_v63, %v366_v15 }
  0x68   : > { %v379_v46 = vand.u32 65535, %v375_v45  ;;  %v380_v47 = vshrl.u32 %v375_v45, 16  ;;  %v421_v34 = vmul.u32 %v2989_v30, %v367_v27 }
  0x69   : > { %v403_v54 = vmul.u32 %v401_v48, %v377_v42  ;;  %v404_v55 = vmul.u32 %v402_v49, %v377_v42  ;;  %v405_v56 = vmul.u32 %v401_v48, %v378_v43  ;;  %v406_v60 = vmul.u32 %v402_v49, %v378_v43 }
  0x6a   : > { %v381_v51 = vmul.u32 %v379_v46, %v377_v42  ;;  %v382_v52 = vmul.u32 %v380_v47, %v377_v42  ;;  %v383_v53 = vmul.u32 %v379_v46, %v378_v43  ;;  %v384_v57 = vmul.u32 %v380_v47, %v378_v43 }
  0x6b   : > { %v407_v61 = vshll.u32 %v404_v55, 16  ;;  %v409_v62 = vshll.u32 %v405_v56, 16  ;;  %v408_v11 = vshrl.u32 %v404_v55, 16  ;;  %v410_v23 = vshrl.u32 %v405_v56, 16 }
  0x6c   : > { %v385_v58 = vshll.u32 %v382_v52, 16  ;;  %v387_v59 = vshll.u32 %v383_v53, 16  ;;  %v386_v7 = vshrl.u32 %v382_v52, 16  ;;  %v388_v17 = vshrl.u32 %v383_v53, 16 }
  0x6d   : > { %vm411_vm6 = vc.u32 %v403_v54, %v407_v61  ;;  %v413_v6 = vadd.s32 %v407_v61, %v403_v54 }
  0x6e   : > { %vm389_vm5 = vc.u32 %v381_v51, %v385_v58  ;;  %v391_v0 = vadd.s32 %v385_v58, %v381_v51  ;;  %v412_v9 = vsel %vm411_vm6, 1, %v2763_v3 }
  0x6f   : > { %v390_v4 = vsel %vm389_vm5, 1, %v2763_v3  ;;  %v414_v13 = vadd.s32 %v412_v9, %v406_v60  ;;  %vm415_vm8 = vc.u32 %v413_v6, %v409_v62  ;;  %v417_v26 = vadd.s32 %v413_v6, %v409_v62 }
  0x70   : > { %v392_v8 = vadd.s32 %v390_v4, %v384_v57  ;;  %vm393_vm7 = vc.u32 %v391_v0, %v387_v59  ;;  %v416_v21 = vsel %vm415_vm8, 1, %v2763_v3 }
  0x71   : > { %v394_v10 = vsel %vm393_vm7, 1, %v2763_v3  ;;  %v418_v24 = vadd.s32 %v416_v21, %v414_v13 }
  0x72   : > { %v396_v19 = vadd.s32 %v394_v10, %v392_v8 }
  0x73   : > { %v419_v29 = vadd.s32 %v418_v24, %v408_v11 }
  0x74   : > { %v397_v25 = vadd.s32 %v396_v19, %v386_v7 }
  0x75   : > { %v420_v33 = vadd.s32 %v419_v29, %v410_v23 }
  0x76   : > { %v398_v31 = vadd.s32 %v397_v25, %v388_v17 }
  0x77   : > { %v424_v35 = vadd.s32 1, %v420_v33 }
  0x78   : > { %vm423_vm9 = vc.u32 %v398_v31, %v417_v26  ;;  %v422_v12 = vadd.s32 %v417_v26, %v398_v31  ;;  %v484_v26 = vstv %s483_s18  ;;  %v486_v31 = vstv %s310_s15 }
  0x79   : > { %v425_v36 = vsel %vm423_vm9, %v424_v35, %v420_v33  ;;  %v315_v35 = vld [vmem:[%s2959_s5 + $0x8] sm:$0xff] }
  0x7a   : > { %v426_v32 = vadd.s32 %v425_v36, %v421_v34  ;;  %v314_v34 = vld [vmem:[%s2959_s5] sm:$0xff] }
  0x7c   : > { %v427_v37 = vadd.s32 536870912, %v426_v32 }
  0x7e   : > { %v428_v38 = vshrl.u32 %v427_v37, 30  ;;  %v317_v37 = vld [vmem:[%s2959_s5 + $0x18] sm:$0xff] }
  0x80   : > { %v429_v39 = vshll.u32 %v428_v38, 30  ;;  %v452_v59 = vsub.s32 4, %v428_v38 }
  0x82   : > { %v430_v40 = vsub.s32 %v426_v32, %v429_v39  ;;  %v453_v0 = vsel %vm330_vm12, %v452_v59, %v428_v38  ;;  %v316_v32 = vld [vmem:[%s2959_s5 + $0x10] sm:$0xff]  ;;  %v318_v38 = vld [vmem:[%s2959_s5 + $0x20] sm:$0xff]  ;;  %v319_v39 = vld [vmem:[%s2959_s5 + $0x28] sm:$0xff] }
  0x83   : > { %v455_v5 = vsel %vm3029_vm13, 0, %v453_v0 }
  0x84   : > { %vm431_vm10 = vcmp.lt.s32.totalorder %v430_v40, 0  ;;  %v432_v41 = vsub.s32 0, %v430_v40  ;;  %v472_v10 = vand.u32 3, %v455_v5 }
  0x86   : > { %v433_v42 = vsel %vm431_vm10, %v432_v41, %v430_v40  ;;  %vm477_vm14 = vcmp.eq.s32.totalorder %v472_v10, 2  ;;  %vm474_vm15 = vcmp.eq.s32.totalorder %v472_v10, 0  ;;  %vm473_vm0 = vcmp.lt.s32.totalorder %v472_v10, 2  ;;  %v321_v41 = vld [vmem:[%s2959_s5 + $0x38] sm:$0xff] }
  0x87   : > { %v434_v43 = vclz %v433_v42 }
  0x89   : > { %v2326_v44 = vadd.s32 4294967294, %v434_v43 }
  0x8b   : > { %vm2327_vm11 = vcmp.lt.s32.totalorder %v2326_v44, 0 }
  0x8c   : > { %v437_v45 = vsel %vm2327_vm11, 0, %v2326_v44  ;;  %v323_v44 = vld [vmem:[%s2959_s5 + $0x48] sm:$0xff] }
  0x8d   : > { %v438_v46 = vsub.s32 32, %v437_v45  ;;  %v439_v47 = vshll.u32 %v430_v40, %v437_v45  ;;  %v442_v48 = vsub.s32 4294967266, %v437_v45  ;;  %v320_v40 = vld [vmem:[%s2959_s5 + $0x30] sm:$0xff] }
  0x8f   : > { %v440_v30 = vshrl.u32 %v422_v12, %v438_v46  ;;  %v443_v49 = vadd.s32 127, %v442_v48 }
  0x91   : > { %v441_v50 = vor.u32 %v440_v30, %v439_v47  ;;  %v444_v51 = vshll.u32 %v443_v49, 23 }
  0x93   : > { %v445_v52 = vor.u32 4788187, %v444_v51  ;;  %v448_v53 = vcvt.s32.f32 %v441_v50 }
  0x95   : > { %v446_v54 = vand.u32 2147483647, %v445_v52 }
  0x97   : > { %v449_v55 = vmul.f32 %v448_v53, %v446_v54 }
  0x99   : > { %v450_v57 = vxor.u32 2147483648, %v449_v55 }
  0x9b   : > { %v451_v58 = vsel %vm330_vm12, %v450_v57, %v449_v55 }
  0x9c   : > { %v454_v60 = vsel %vm3029_vm13, %v2970_v2, %v451_v58  ;;  %v322_v2 = vld [vmem:[%s2959_s5 + $0x40] sm:$0xff]  ;;  %s2358_s5 = sshll.u32 %s2735_s21, 1 }
  0x9d   : > { %v456_v61 = vmul.f32 %v454_v60, %v454_v60  ;;  %s3999_s29 = sadd.s32 %s2367_s9, %s2358_s5  ;;  %s2609_s9 = scalar_lea.hbm %s4341_s13, 800 }
  0x9e   : > { %s4313_s22 = sshll.u32 %s3999_s29, 3 }
  0x9f   : > { %v457_v62 = vmul.f32 -0.001358992, %v456_v61  ;;  %v464_v63 = vmul.f32 -0.00019511016, %v456_v61  ;;  %s2123_s8 = scalar_lea.hbm %s4341_s13, %s4313_s22 }
  0xa0   : > { %s2126_s30 = sshll.u32 %s2123_s8, 4  ;;  %s4032_s30 = int_to_ptr.hbm [resolvable:$true] %s2126_s30 }
  0xa1   : > { %v458_v1 = vadd.f32 0.041655596, %v457_v62  ;;  %v465_v4 = vadd.f32 0.008332121, %v464_v63  ;;  %s2603_s28 = sshra.s32 %s4032_s30, 4  ;;  %s2604_s28 = int_to_ptr.hbm [resolvable:$true] %s2603_s28 }
  0xa2   : > { %s2605_s15 = scalar_lea.hbm %s2604_s28, 80  ;;  %p2610_p12 = scmp.lt.s32.totalorder %s2604_s28, %s4341_s13 }
  0xa3   : > { %v459_v6 = vmul.f32 %v458_v1, %v456_v61  ;;  %v466_v7 = vmul.f32 %v465_v4, %v456_v61  ;;  %p2606_p1 = scmp.ne.s32.totalorder %s2604_s28, %s2605_s15  ;;  %p2611_p13 = scmp.lt.s32.totalorder %s2609_s9, %s2605_s15 }
  0xa5   : > { %v460_v8 = vadd.f32 -0.4999988, %v459_v6  ;;  %v467_v9 = vadd.f32 -0.16666654, %v466_v7  ;;  %p2607_p3 = pnand %p2606_p1, %p2867_p8  ;;  %p2612_p10 = por %p2611_p13, %p2610_p12 }
  0xa7   : > { %v461_v11 = vmul.f32 %v460_v8, %v456_v61  ;;  %v468_v13 = vmul.f32 %v467_v9, %v456_v61  ;;  %p2608_p7 = pneg %p2607_p3 }
  0xa9   : > { %v462_v15 = vadd.f32 1.0, %v461_v11  ;;  %v469_v17 = vadd.f32 1.0, %v468_v13  ;;  %p2613_p11 = pnand %p2612_p10, %p2608_p7 }
  0xab   : > { %v470_v19 = vmul.f32 %v469_v17, %v454_v60  ;;  %v478_v21 = vxor.u32 2147483648, %v462_v15 }
  0xad   : > { %v475_v23 = vxor.u32 2147483648, %v470_v19  ;;  %v479_v24 = vsel %vm477_vm14, %v478_v21, %v470_v19 }
  0xaf   : > { %v476_v25 = vsel %vm474_vm15, %v462_v15, %v475_v23 }
  0xb0   : > { %v480_v27 = vsel %vm473_vm0, %v476_v25, %v479_v24 }
  0xb1   : > { %v481_v29 = vsel %vm471_vm1, nan, %v480_v27 }
  0xb2   : > { %v485_v33 = vmul.f32 %v484_v26, %v481_v29 }
  0xb4   : > { %v487_v36 = vadd.f32 %v486_v31, %v485_v33 }
  0xb6   : > { %v489_v42 = vperm.slane %v487_v36, 0  ;;  %v490_v43 = vperm.slane %v487_v36, 1 }
  0xb8   : > { %v493_v12 = vadd.f32 %v489_v42, %v314_v34  ;;  %v494_v45 = vadd.f32 %v490_v43, %v315_v35  ;;  %v495_v46 = vadd.f32 %v489_v42, %v316_v32  ;;  %v496_v47 = vadd.f32 %v490_v43, %v317_v37 }
  0xb9   : > { %v497_v48 = vadd.f32 %v489_v42, %v318_v38  ;;  %v498_v30 = vadd.f32 %v490_v43, %v319_v39  ;;  %v499_v49 = vadd.f32 %v489_v42, %v320_v40  ;;  %v500_v50 = vadd.f32 %v490_v43, %v321_v41 }
  0xba   : > { %v3049_v51 = vadd.f32 %v489_v42, %v322_v2  ;;  %v502_v52 = vadd.f32 %v490_v43, %v323_v44  ;;  %v503_v53 = vmul.f32 0.15915494, %v493_v12  ;;  %v504_v54 = vmul.f32 0.15915494, %v494_v45 }
  0xbb   : > { %v505_v55 = vmul.f32 0.15915494, %v495_v46  ;;  %v506_v56 = vmul.f32 0.15915494, %v496_v47  ;;  %v507_v57 = vmul.f32 0.15915494, %v497_v48 }
  0xbc   : > { %v508_v58 = vmul.f32 0.15915494, %v498_v30  ;;  %v509_v59 = vmul.f32 0.15915494, %v499_v49  ;;  %v510_v60 = vmul.f32 0.15915494, %v500_v50  ;;  %v513_v61 = vfloor.f32 %v503_v53 }
  0xbd   : > { %v511_v62 = vmul.f32 0.15915494, %v3049_v51  ;;  %v514_v63 = vfloor.f32 %v504_v54  ;;  %v515_v0 = vfloor.f32 %v505_v55  ;;  %v512_v1 = vmul.f32 0.15915494, %v502_v52 }
  0xbe   : > { %v516_v4 = vfloor.f32 %v506_v56  ;;  %v517_v5 = vfloor.f32 %v507_v57  ;;  %v518_v6 = vfloor.f32 %v508_v58  ;;  %v519_v7 = vfloor.f32 %v509_v59 }
  0xbf   : > { %v520_v8 = vfloor.f32 %v510_v60  ;;  %v523_v9 = vmul.f32 6.2831855, %v513_v61  ;;  %v521_v10 = vfloor.f32 %v511_v62  ;;  %v524_v11 = vmul.f32 6.2831855, %v514_v63 }
  0xc0   : > { %v525_v13 = vmul.f32 6.2831855, %v515_v0  ;;  %v526_v15 = vmul.f32 6.2831855, %v516_v4  ;;  %v527_v17 = vmul.f32 6.2831855, %v517_v5  ;;  %v522_v21 = vfloor.f32 %v512_v1 }
  0xc1   : > { %v3052_v19 = vsub.f32 %v493_v12, %v523_v9  ;;  %v528_v23 = vmul.f32 6.2831855, %v518_v6  ;;  %v3054_v24 = vsub.f32 %v494_v45, %v524_v11  ;;  %v529_v25 = vmul.f32 6.2831855, %v519_v7 }
  0xc2   : > { %v3056_v26 = vsub.f32 %v495_v46, %v525_v13  ;;  %v530_v27 = vmul.f32 6.2831855, %v520_v8  ;;  %v531_v29 = vmul.f32 6.2831855, %v521_v10  ;;  %v3063_v31 = vsub.f32 %v496_v47, %v526_v15 }
  0xc3   : > { %543 = vst [vmem:[%s3059_s26] sm:$0xff] %v3052_v19  ;;  %v3067_v33 = vsub.f32 %v497_v48, %v527_v17  ;;  %v553_v34 = vand.u32 2147483647, %v3052_v19  ;;  %v556_v35 = vand.u32 2139095040, %v3052_v19  ;;  %v710_v36 = vand.u32 2139095040, %v3054_v24 }
  0xc4   : > { %544 = vst [vmem:[%s3059_s26 + $0x8] sm:$0xff] %v3054_v24  ;;  %v532_v32 = vmul.f32 6.2831855, %v522_v21  ;;  %v538_v37 = vsub.f32 %v498_v30, %v528_v23  ;;  %v707_v38 = vand.u32 2147483647, %v3054_v24  ;;  %v539_v39 = vsub.f32 %v499_v49, %v529_v25 }
  0xc5   : > { %545 = vst [vmem:[%s3059_s26 + $0x10] sm:$0xff] %v3056_v26  ;;  %v557_v40 = vshrl.u32 %v556_v35, 23  ;;  %v560_v41 = vand.u32 8388607, %v553_v34  ;;  %v864_v42 = vand.u32 2139095040, %v3056_v26  ;;  %v540_v43 = vsub.f32 %v500_v50, %v530_v27 }
  0xc6   : > { %546 = vst [vmem:[%s3059_s26 + $0x18] sm:$0xff] %v3063_v31  ;;  %v711_v2 = vshrl.u32 %v710_v36, 23  ;;  %v714_v44 = vand.u32 8388607, %v707_v38  ;;  %v541_v12 = vsub.f32 %v3049_v51, %v531_v29  ;;  %v3087_v46 = vsub.f32 %v502_v52, %v532_v32 }
  0xc7   : > { %547 = vst [vmem:[%s3059_s26 + $0x20] sm:$0xff] %v3067_v33  ;;  %v2328_v45 = vadd.s32 4294967169, %v557_v40  ;;  %v561_v47 = vor.u32 8388608, %v560_v41  ;;  %v865_v49 = vshrl.u32 %v864_v42, 23 }
  0xc8   : > { %548 = vst [vmem:[%s3059_s26 + $0x28] sm:$0xff] %v538_v37  ;;  %v2331_v48 = vadd.s32 4294967169, %v711_v2  ;;  %v715_v50 = vor.u32 8388608, %v714_v44 }
  0xc9   : > { %549 = vst [vmem:[%s3059_s26 + $0x30] sm:$0xff] %v539_v39  ;;  %v563_v30 = vadd.s32 1, %v2328_v45  ;;  %v3093_v55 = vshll.u32 %v561_v47, 8  ;;  %v2334_v57 = vadd.s32 4294967169, %v865_v49 }
  0xca   : > { %550 = vst [vmem:[%s3059_s26 + $0x38] sm:$0xff] %v540_v43  ;;  %v717_v53 = vadd.s32 1, %v2331_v48  ;;  %v3099_v59 = vshll.u32 %v715_v50, 8 }
  0xcb   : > { %551 = vst [vmem:[%s3059_s26 + $0x40] sm:$0xff] %v541_v12  ;;  %vm564_vm2 = vcmp.gt.s32.totalorder %v563_v30, 0  ;;  %v602_v4 = vand.u32 65535, %v3093_v55  ;;  %v603_v5 = vshrl.u32 %v3093_v55, 16  ;;  %v3111_v9 = vadd.s32 1, %v2334_v57 }
  0xcc   : > { %552 = vst [vmem:[%s3059_s26 + $0x48] sm:$0xff] %v3087_v46  ;;  %v565_v54 = vsel %vm564_vm2, %v563_v30, 0  ;;  %vm718_vm3 = vcmp.gt.s32.totalorder %v717_v53, 0 }
  0xcd   : > { %v567_v51 = vand.u32 31, %v565_v54  ;;  %v719_v56 = vsel %vm718_vm3, %v717_v53, 0  ;;  %v3095_v52 = vshrl.u32 %v565_v54, 5  ;;  %vm872_vm1 = vcmp.gt.s32.totalorder %v3111_v9, 0 }
  0xce   : > { %v3097_v58 = vand.u32 31, %v719_v56  ;;  %v3127_v36 = vshrl.u32 %v719_v56, 5 }
  0xcf   : > { %v568_v60 = vsub.s32 32, %v567_v51  ;;  %v570_v61 = vshll.u32 %v2757_v14, %v567_v51  ;;  %v573_v62 = vshll.u32 %v2758_v16, %v567_v51  ;;  %v576_v63 = vshll.u32 %v2759_v18, %v567_v51 }
  0xd0   : > { %v579_v0 = vshll.u32 %v2760_v20, %v567_v51  ;;  %v582_v1 = vshll.u32 %v2761_v22, %v567_v51  ;;  %vm585_vm4 = vcmp.lt.s32.totalorder %v3095_v52, 1  ;;  %vm588_vm5 = vcmp.lt.s32.totalorder %v3095_v52, 4 }
  0xd1   : > { %v571_v6 = vshrl.u32 %v2758_v16, %v568_v60  ;;  %v574_v7 = vshrl.u32 %v2759_v18, %v568_v60  ;;  %v577_v8 = vshrl.u32 %v2760_v20, %v568_v60  ;;  %v580_v10 = vshrl.u32 %v2761_v22, %v568_v60 }
  0xd2   : > { %v583_v11 = vshrl.u32 %v2762_v28, %v568_v60  ;;  %v3118_v21 = vsub.s32 32, %v3097_v58  ;;  %v569_v23 = vshrl.u32 %v2757_v14, %v568_v60  ;;  %vm587_vm6 = vcmp.lt.s32.totalorder %v3095_v52, 3 }
  0xd3   : > { %v572_v13 = vor.u32 %v571_v6, %v570_v61  ;;  %v575_v15 = vor.u32 %v574_v7, %v573_v62  ;;  %v578_v17 = vor.u32 %v577_v8, %v576_v63  ;;  %v581_v25 = vor.u32 %v580_v10, %v579_v0 }
  0xd4   : > { %v584_v27 = vor.u32 %v583_v11, %v582_v1  ;;  %vm586_vm7 = vcmp.lt.s32.totalorder %v3095_v52, 2  ;;  %v724_v39 = vshll.u32 %v2757_v14, %v3097_v58  ;;  %v727_v40 = vshll.u32 %v2758_v16, %v3097_v58 }
  0xd5   : > { %v593_v29 = vsel %vm585_vm4, %v572_v13, %v575_v15  ;;  %v597_v35 = vsel %vm585_vm4, %v575_v15, %v578_v17  ;;  %v594_v32 = vsel %vm588_vm5, %v581_v25, 920167782  ;;  %v590_v41 = vsel %vm588_vm5, %v578_v17, 2102212464 }
  0xd6   : > { %v598_v37 = vsel %vm588_vm5, %v584_v27, 1326507024  ;;  %v595_v42 = vsel %vm587_vm6, %v578_v17, %v594_v32  ;;  %v725_v2 = vshrl.u32 %v2758_v16, %v3118_v21  ;;  %v589_v44 = vsel %vm585_vm4, %v569_v23, %v572_v13 }
  0xd7   : > { %v599_v43 = vsel %vm587_vm6, %v581_v25, %v598_v37  ;;  %v596_v12 = vsel %vm586_vm7, %v593_v29, %v595_v42  ;;  %v728_v47 = vshrl.u32 %v2759_v18, %v3118_v21  ;;  %v591_v53 = vsel %vm587_vm6, %v575_v15, %v590_v41 }
  0xd8   : > { %v600_v45 = vsel %vm586_vm7, %v597_v35, %v599_v43  ;;  %v626_v49 = vand.u32 65535, %v596_v12  ;;  %v627_v50 = vshrl.u32 %v596_v12, 16  ;;  %v3155_v54 = vor.u32 %v725_v2, %v724_v39 }
  0xd9   : > { %v604_v48 = vand.u32 65535, %v600_v45  ;;  %v605_v30 = vshrl.u32 %v600_v45, 16  ;;  %v3157_v51 = vor.u32 %v728_v47, %v727_v40  ;;  %v730_v56 = vshll.u32 %v2759_v18, %v3097_v58 }
  0xda   : > { %v731_v62 = vshrl.u32 %v2760_v20, %v3118_v21  ;;  %v628_v0 = vmul.u32 %v626_v49, %v602_v4  ;;  %v629_v1 = vmul.u32 %v627_v50, %v602_v4  ;;  %v630_v6 = vmul.u32 %v626_v49, %v603_v5 }
  0xdb   : > { %v606_v57 = vmul.u32 %v604_v48, %v602_v4  ;;  %v607_v60 = vmul.u32 %v605_v30, %v602_v4  ;;  %v608_v61 = vmul.u32 %v604_v48, %v603_v5  ;;  %v609_v63 = vmul.u32 %v605_v30, %v603_v5 }
  0xdc   : > { %v631_v11 = vmul.u32 %v627_v50, %v603_v5  ;;  %v632_v15 = vshll.u32 %v629_v1, 16  ;;  %v633_v17 = vshrl.u32 %v629_v1, 16  ;;  %v634_v23 = vshll.u32 %v630_v6, 16 }
  0xdd   : > { %v610_v7 = vshll.u32 %v607_v60, 16  ;;  %v611_v8 = vshrl.u32 %v607_v60, 16  ;;  %v612_v10 = vshll.u32 %v608_v61, 16  ;;  %v613_v13 = vshrl.u32 %v608_v61, 16 }
  0xde   : > { %v635_v27 = vshrl.u32 %v630_v6, 16  ;;  %v733_v29 = vshll.u32 %v2760_v20, %v3097_v58  ;;  %vm636_vm9 = vc.u32 %v628_v0, %v632_v15  ;;  %v638_v32 = vadd.s32 %v632_v15, %v628_v0 }
  0xdf   : > { %vm614_vm8 = vc.u32 %v606_v57, %v610_v7  ;;  %v616_v25 = vadd.s32 %v610_v7, %v606_v57  ;;  %v734_v4 = vshrl.u32 %v2761_v22, %v3118_v21  ;;  %v637_v5 = vsel %vm636_vm9, 1, %v2763_v3 }
  0xe0   : > { %v615_v35 = vsel %vm614_vm8, 1, %v2763_v3  ;;  %v736_v39 = vshll.u32 %v2761_v22, %v3097_v58  ;;  %v639_v41 = vadd.s32 %v637_v5, %v631_v11  ;;  %vm640_vm11 = vc.u32 %v638_v32, %v634_v23 }
  0xe1   : > { %v617_v37 = vadd.s32 %v615_v35, %v609_v63  ;;  %vm618_vm10 = vc.u32 %v616_v25, %v612_v10  ;;  %v732_v42 = vor.u32 %v731_v62, %v730_v56  ;;  %v641_v2 = vsel %vm640_vm11, 1, %v2763_v3 }
  0xe2   : > { %v619_v40 = vsel %vm618_vm10, 1, %v2763_v3  ;;  %v735_v12 = vor.u32 %v734_v4, %v733_v29  ;;  %v737_v45 = vshrl.u32 %v2762_v28, %v3118_v21  ;;  %v3175_v47 = vadd.s32 %v638_v32, %v634_v23 }
  0xe3   : > { %v621_v43 = vadd.s32 %v619_v40, %v617_v37  ;;  %v643_v48 = vadd.s32 %v641_v2, %v639_v41  ;;  %vm739_vm12 = vcmp.lt.s32.totalorder %v3127_v36, 1  ;;  %vm741_vm13 = vcmp.lt.s32.totalorder %v3127_v36, 3 }
  0xe4   : > { %v738_v30 = vor.u32 %v737_v45, %v736_v39  ;;  %vm740_vm14 = vcmp.lt.s32.totalorder %v3127_v36, 2  ;;  %vm742_vm15 = vcmp.lt.s32.totalorder %v3127_v36, 4  ;;  %v592_v49 = vsel %vm586_vm7, %v589_v44, %v591_v53 }
  0xe5   : > { %v622_v58 = vadd.s32 %v621_v43, %v611_v8  ;;  %v644_v50 = vadd.s32 %v643_v48, %v633_v17  ;;  %v747_v56 = vsel %vm739_vm12, %v3155_v54, %v3157_v51  ;;  %v748_v57 = vsel %vm742_vm15, %v735_v12, 920167782 }
  0xe6   : > { %v749_v61 = vsel %vm741_vm13, %v732_v42, %v748_v57  ;;  %v751_v62 = vsel %vm739_vm12, %v3157_v51, %v732_v42  ;;  %v756_v52 = vand.u32 65535, %v3099_v59  ;;  %v752_v63 = vsel %vm742_vm15, %v738_v30, 1326507024 }
  0xe7   : > { %v3189_v60 = vadd.s32 %v622_v58, %v613_v13  ;;  %v645_v44 = vadd.s32 %v644_v50, %v635_v27  ;;  %v750_v53 = vsel %vm740_vm14, %v747_v56, %v749_v61  ;;  %v757_v0 = vshrl.u32 %v3099_v59, 16 }
  0xe8   : > { %v646_v1 = vmul.u32 %v3093_v55, %v592_v49  ;;  %v753_v6 = vsel %vm741_vm13, %v735_v12, %v752_v63  ;;  %v780_v7 = vand.u32 65535, %v750_v53  ;;  %v781_v11 = vshrl.u32 %v750_v53, 16 }
  0xe9   : > { %vm648_vm0 = vc.u32 %v3189_v60, %v3175_v47  ;;  %v649_v8 = vadd.s32 1, %v645_v44  ;;  %v754_v10 = vsel %vm740_vm14, %v751_v62, %v753_v6  ;;  %v723_v13 = vshrl.u32 %v2757_v14, %v3118_v21 }
  0xea   : > { %v758_v15 = vand.u32 65535, %v754_v10  ;;  %v759_v17 = vshrl.u32 %v754_v10, 16  ;;  %v744_v23 = vsel %vm742_vm15, %v732_v42, 2102212464  ;;  %v783_v25 = vmul.u32 %v781_v11, %v756_v52 }
  0xeb   : > { %v650_v55 = vsel %vm648_vm0, %v649_v8, %v645_v44  ;;  %v784_v27 = vmul.u32 %v780_v7, %v757_v0  ;;  %v782_v4 = vmul.u32 %v780_v7, %v756_v52  ;;  %v861_v39 = vand.u32 2147483647, %v3056_v26 }
  0xec   : > { %v651_v29 = vadd.s32 %v650_v55, %v646_v1  ;;  %v760_v35 = vmul.u32 %v758_v15, %v756_v52  ;;  %v761_v32 = vmul.u32 %v759_v17, %v756_v52  ;;  %v762_v37 = vmul.u32 %v758_v15, %v757_v0 }
  0xed   : > { %v786_v5 = vshll.u32 %v783_v25, 16  ;;  %v873_v21 = vsel %vm872_vm1, %v3111_v9, 0  ;;  %v743_v41 = vsel %vm739_vm12, %v723_v13, %v3155_v54  ;;  %v763_v43 = vmul.u32 %v759_v17, %v757_v0 }
  0xee   : > { %v652_v40 = vadd.s32 536870912, %v651_v29  ;;  %v764_v2 = vshll.u32 %v761_v32, 16  ;;  %v745_v42 = vsel %vm741_vm13, %v3157_v51, %v744_v23  ;;  %v766_v12 = vshll.u32 %v762_v37, 16 }
  0xef   : > { %v785_v45 = vmul.u32 %v781_v11, %v757_v0  ;;  %v788_v48 = vshll.u32 %v784_v27, 16  ;;  %vm790_vm3 = vc.u32 %v782_v4, %v786_v5  ;;  %v792_v50 = vadd.s32 %v786_v5, %v782_v4 }
  0xf0   : > { %v3222_v58 = vshrl.u32 %v652_v40, 30  ;;  %vm768_vm2 = vc.u32 %v760_v35, %v764_v2  ;;  %v770_v30 = vadd.s32 %v764_v2, %v760_v35  ;;  %v791_v49 = vsel %vm790_vm3, 1, %v2763_v3 }
  0xf1   : > { %v769_v9 = vsel %vm768_vm2, 1, %v2763_v3  ;;  %v875_v54 = vand.u32 31, %v873_v21  ;;  %v765_v57 = vshrl.u32 %v761_v32, 16  ;;  %v787_v62 = vshrl.u32 %v783_v25, 16 }
  0xf2   : > { %v654_v56 = vshll.u32 %v3222_v58, 30  ;;  %v771_v61 = vadd.s32 %v769_v9, %v763_v43  ;;  %vm772_vm4 = vc.u32 %v770_v30, %v766_v12  ;;  %v793_v52 = vadd.s32 %v791_v49, %v785_v45 }
  0xf3   : > { %v773_v51 = vsel %vm772_vm4, 1, %v2763_v3  ;;  %vm794_vm5 = vc.u32 %v792_v50, %v788_v48  ;;  %v767_v53 = vshrl.u32 %v762_v37, 16  ;;  %v789_v1 = vshrl.u32 %v784_v27, 16 }
  0xf4   : > { %v655_v44 = vsub.s32 %v651_v29, %v654_v56  ;;  %v775_v63 = vadd.s32 %v773_v51, %v771_v61  ;;  %v795_v0 = vsel %vm794_vm5, 1, %v2763_v3  ;;  %v3229_v7 = vsub.s32 32, %v875_v54 }
  0xf5   : > { %v797_v6 = vadd.s32 %v795_v0, %v793_v52  ;;  %v3231_v11 = vadd.s32 %v792_v50, %v788_v48  ;;  %v746_v13 = vsel %vm740_vm14, %v743_v41, %v745_v42  ;;  %v868_v23 = vand.u32 8388607, %v861_v39 }
  0xf6   : > { %vm656_vm6 = vcmp.lt.s32.totalorder %v655_v44, 0  ;;  %v657_v8 = vsub.s32 0, %v655_v44  ;;  %v776_v10 = vadd.s32 %v775_v63, %v765_v57  ;;  %v878_v29 = vshll.u32 %v2757_v14, %v875_v54 }
  0xf7   : > { %v798_v15 = vadd.s32 %v797_v6, %v787_v62  ;;  %v879_v35 = vshrl.u32 %v2758_v16, %v3229_v7  ;;  %v647_v32 = vadd.s32 %v3175_v47, %v3189_v60  ;;  %v800_v36 = vmul.u32 %v3099_v59, %v746_v13 }
  0xf8   : > { %v658_v17 = vsel %vm656_vm6, %v657_v8, %v655_v44  ;;  %v3235_v55 = vadd.s32 %v776_v10, %v767_v53  ;;  %v3247_v4 = vshrl.u32 %v873_v21, 5  ;;  %v887_v40 = vshll.u32 %v2760_v20, %v875_v54 }
  0xf9   : > { %v659_v25 = vclz %v658_v17  ;;  %v799_v27 = vadd.s32 %v798_v15, %v789_v1  ;;  %v888_v41 = vshrl.u32 %v2761_v22, %v3229_v7  ;;  %v881_v43 = vshll.u32 %v2758_v16, %v875_v54 }
  0xfa   : > { %vm802_vm7 = vc.u32 %v3235_v55, %v3231_v11  ;;  %v882_v2 = vshrl.u32 %v2759_v18, %v3229_v7  ;;  %v884_v47 = vshll.u32 %v2759_v18, %v875_v54  ;;  %v885_v59 = vshrl.u32 %v2760_v20, %v3229_v7 }
  0xfb   : > { %v2329_v37 = vadd.s32 4294967294, %v659_v25  ;;  %v803_v5 = vadd.s32 1, %v799_v27  ;;  %v677_v60 = vsub.s32 4, %v3222_v58  ;;  %v880_v42 = vor.u32 %v879_v35, %v878_v29 }
  0xfc   : > { %v890_v48 = vshll.u32 %v2761_v22, %v875_v54  ;;  %v891_v30 = vshrl.u32 %v2762_v28, %v3229_v7  ;;  %v889_v56 = vor.u32 %v888_v41, %v887_v40  ;;  %v883_v61 = vor.u32 %v882_v2, %v881_v43 }
  0xfd   : > { %vm2330_vm8 = vcmp.lt.s32.totalorder %v2329_v37, 0  ;;  %v804_v21 = vsel %vm802_vm7, %v803_v5, %v799_v27  ;;  %v886_v51 = vor.u32 %v885_v59, %v884_v47  ;;  %vm893_vm9 = vcmp.lt.s32.totalorder %v3247_v4, 1 }
  0xfe   : > { %v662_v12 = vsel %vm2330_vm8, 0, %v2329_v37  ;;  %v805_v45 = vadd.s32 %v804_v21, %v800_v36  ;;  %vm895_vm10 = vcmp.lt.s32.totalorder %v3247_v4, 3  ;;  %vm896_vm11 = vcmp.lt.s32.totalorder %v3247_v4, 4 }
  0xff   : > { %v663_v9 = vsub.s32 32, %v662_v12  ;;  %v664_v49 = vshll.u32 %v655_v44, %v662_v12  ;;  %v667_v50 = vsub.s32 4294967266, %v662_v12  ;;  %vm555_vm12 = vcmp.lt.s32.totalorder %v3052_v19, 0 }
 0x100   : > { %v806_v57 = vadd.s32 536870912, %v805_v45  ;;  %v869_v53 = vor.u32 8388608, %v868_v23  ;;  %v892_v63 = vor.u32 %v891_v30, %v890_v48  ;;  %v678_v1 = vsel %vm555_vm12, %v677_v60, %v3222_v58 }
 0x101   : > { %v665_v62 = vshrl.u32 %v647_v32, %v663_v9  ;;  %v668_v52 = vadd.s32 127, %v667_v50  ;;  %v902_v6 = vsel %vm896_vm11, %v889_v56, 920167782  ;;  %vm894_vm13 = vcmp.lt.s32.totalorder %v3247_v4, 2 }
 0x102   : > { %v3266_v54 = vshrl.u32 %v806_v57, 30  ;;  %v901_v10 = vsel %vm893_vm9, %v880_v42, %v883_v61  ;;  %v903_v13 = vsel %vm895_vm10, %v886_v51, %v902_v6  ;;  %vm3281_vm14 = vcmp.le.f32.partialorder %v553_v34, 0.7853982 }
 0x103   : > { %v666_v44 = vor.u32 %v665_v62, %v664_v49  ;;  %v669_v0 = vshll.u32 %v668_v52, 23  ;;  %v905_v23 = vsel %vm893_vm9, %v883_v61, %v886_v51  ;;  %v680_v25 = vsel %vm3281_vm14, 0, %v678_v1 }
 0x104   : > { %v808_v8 = vshll.u32 %v3266_v54, 30  ;;  %v906_v29 = vsel %vm896_vm11, %v892_v63, 1326507024  ;;  %v3293_v35 = vshll.u32 %v869_v53, 8  ;;  %v877_v34 = vshrl.u32 %v2757_v14, %v3229_v7 }
 0x105   : > { %v670_v58 = vor.u32 4788187, %v669_v0  ;;  %v673_v17 = vcvt.s32.f32 %v666_v44  ;;  %v904_v36 = vsel %vm894_vm13, %v901_v10, %v903_v13  ;;  %v907_v37 = vsel %vm895_vm10, %v889_v56, %v906_v29 }
 0x106   : > { %v3289_v27 = vsub.s32 %v805_v45, %v808_v8  ;;  %v908_v40 = vsel %vm894_vm13, %v905_v23, %v907_v37  ;;  %v910_v41 = vand.u32 65535, %v3293_v35  ;;  %v911_v2 = vshrl.u32 %v3293_v35, 16 }
 0x107   : > { %v671_v32 = vand.u32 2147483647, %v670_v58  ;;  %v912_v47 = vand.u32 65535, %v908_v40  ;;  %v913_v7 = vshrl.u32 %v908_v40, 16  ;;  %v898_v60 = vsel %vm896_vm11, %v886_v51, 2102212464 }
 0x108   : > { %vm810_vm15 = vcmp.lt.s32.totalorder %v3289_v27, 0  ;;  %v811_v5 = vsub.s32 0, %v3289_v27  ;;  %v935_v21 = vshrl.u32 %v904_v36, 16  ;;  %v3310_v9 = vand.u32 3, %v680_v25 }
 0x109   : > { %v674_v43 = vmul.f32 %v673_v17, %v671_v32  ;;  %v914_v48 = vmul.u32 %v912_v47, %v910_v41  ;;  %v915_v30 = vmul.u32 %v913_v7, %v910_v41  ;;  %v801_v49 = vadd.s32 %v3231_v11, %v3235_v55 }
 0x10a   : > { %v812_v59 = vsel %vm810_vm15, %v811_v5, %v3289_v27  ;;  %v897_v50 = vsel %vm893_vm9, %v877_v34, %v880_v42  ;;  %v3316_v56 = vmul.u32 %v912_v47, %v911_v2  ;;  %v899_v51 = vsel %vm895_vm10, %v883_v61, %v898_v60 }
 0x10b   : > { %v675_v12 = vxor.u32 2147483648, %v674_v43  ;;  %v813_v45 = vclz %v812_v59  ;;  %v918_v52 = vshll.u32 %v915_v30, 16  ;;  %v831_v11 = vsub.s32 4, %v3266_v54 }
 0x10c   : > { %v917_v55 = vmul.u32 %v913_v7, %v911_v2  ;;  %v934_v63 = vand.u32 65535, %v904_v36  ;;  %v3330_v44 = vmul.u32 %v935_v21, %v910_v41  ;;  %v920_v61 = vshll.u32 %v3316_v56, 16 }
 0x10d   : > { %v676_v57 = vsel %vm555_vm12, %v675_v12, %v674_v43  ;;  %v2332_v62 = vadd.s32 4294967294, %v813_v45  ;;  %vm922_vm1 = vc.u32 %v914_v48, %v918_v52  ;;  %v924_v6 = vadd.s32 %v918_v52, %v914_v48 }
 0x10e   : > { %v3325_v53 = vsel %vm3281_vm14, %v3052_v19, %v676_v57  ;;  %v923_v1 = vsel %vm922_vm1, 1, %v2763_v3  ;;  %vm709_vm2 = vcmp.lt.s32.totalorder %v3054_v24, 0  ;;  %v936_v23 = vmul.u32 %v934_v63, %v910_v41 }
 0x10f   : > { %v681_v42 = vmul.f32 %v3325_v53, %v3325_v53  ;;  %vm2333_vm0 = vcmp.lt.s32.totalorder %v2332_v62, 0  ;;  %v925_v17 = vadd.s32 %v923_v1, %v917_v55  ;;  %v938_v25 = vmul.u32 %v934_v63, %v911_v2 }
 0x110   : > { %v816_v0 = vsel %vm2333_vm0, 0, %v2332_v62  ;;  %v919_v36 = vshrl.u32 %v915_v30, 16  ;;  %vm702_vm3 = vcmp.eq.s32.totalorder %v3310_v9, 2  ;;  %vm926_vm4 = vc.u32 %v924_v6, %v920_v61 }
 0x111   : > { %v682_v8 = vmul.f32 -0.001358992, %v681_v42  ;;  %v689_v10 = vmul.f32 -0.00019511016, %v681_v42  ;;  %v817_v13 = vsub.s32 32, %v816_v0  ;;  %v818_v15 = vshll.u32 %v3289_v27, %v816_v0 }
 0x112   : > { %v821_v58 = vsub.s32 4294967266, %v816_v0  ;;  %v939_v5 = vmul.u32 %v935_v21, %v911_v2  ;;  %v940_v40 = vshll.u32 %v3330_v44, 16  ;;  %v927_v27 = vsel %vm926_vm4, 1, %v2763_v3 }
 0x113   : > { %v683_v29 = vadd.f32 0.041655596, %v682_v8  ;;  %v690_v32 = vadd.f32 0.008332121, %v689_v10  ;;  %v819_v34 = vshrl.u32 %v801_v49, %v817_v13  ;;  %vm3341_vm5 = vcmp.le.f32.partialorder %v707_v38, 0.7853982 }
 0x114   : > { %v822_v37 = vadd.s32 127, %v821_v58  ;;  %v921_v60 = vshrl.u32 %v3316_v56, 16  ;;  %v929_v12 = vadd.s32 %v927_v27, %v925_v17  ;;  %v942_v45 = vshll.u32 %v938_v25, 16 }
 0x115   : > { %v684_v43 = vmul.f32 %v683_v29, %v681_v42  ;;  %v691_v47 = vmul.f32 %v690_v32, %v681_v42  ;;  %v820_v7 = vor.u32 %v819_v34, %v818_v15  ;;  %vm944_vm6 = vc.u32 %v936_v23, %v940_v40 }
 0x116   : > { %v823_v59 = vshll.u32 %v822_v37, 23  ;;  %v930_v49 = vadd.s32 %v929_v12, %v919_v36  ;;  %v945_v57 = vsel %vm944_vm6, 1, %v2763_v3  ;;  %v946_v62 = vadd.s32 %v940_v40, %v936_v23 }
 0x117   : > { %v685_v48 = vadd.f32 -0.4999988, %v684_v43  ;;  %v692_v2 = vadd.f32 -0.16666654, %v691_v47  ;;  %v827_v21 = vcvt.s32.f32 %v820_v7  ;;  %v900_v38 = vsel %vm894_vm13, %v897_v50, %v899_v51 }
 0x118   : > { %v824_v30 = vor.u32 4788187, %v823_v59  ;;  %v947_v63 = vadd.s32 %v945_v57, %v939_v5  ;;  %v832_v56 = vsel %vm709_vm2, %v831_v11, %v3266_v54  ;;  %v941_v61 = vshrl.u32 %v3330_v44, 16 }
 0x119   : > { %v686_v52 = vmul.f32 %v685_v48, %v681_v42  ;;  %v693_v55 = vmul.f32 %v692_v2, %v681_v42  ;;  %vm948_vm7 = vc.u32 %v946_v62, %v942_v45  ;;  %v1018_v10 = vand.u32 2139095040, %v3063_v31 }
 0x11a   : > { %v825_v0 = vand.u32 2147483647, %v824_v30  ;;  %v949_v8 = vsel %vm948_vm7, 1, %v2763_v3  ;;  %v3355_v42 = vadd.s32 %v930_v49, %v921_v60  ;;  %v943_v4 = vshrl.u32 %v938_v25, 16 }
 0x11b   : > { %v687_v1 = vadd.f32 1.0, %v686_v52  ;;  %v694_v6 = vadd.f32 1.0, %v693_v55  ;;  %v951_v50 = vadd.s32 %v949_v8, %v947_v63  ;;  %v3358_v58 = vadd.s32 %v946_v62, %v942_v45 }
 0x11c   : > { %v828_v13 = vmul.f32 %v827_v21, %v825_v0  ;;  %v1019_v54 = vshrl.u32 %v1018_v10, 23  ;;  %vm696_vm8 = vweird.f32 %v3052_v19  ;;  %vm699_vm9 = vcmp.eq.s32.totalorder %v3310_v9, 0 }
 0x11d   : > { %v695_v51 = vmul.f32 %v694_v6, %v3325_v53  ;;  %v703_v15 = vxor.u32 2147483648, %v687_v1  ;;  %v952_v44 = vadd.s32 %v951_v50, %v941_v61  ;;  %vm698_vm10 = vcmp.lt.s32.totalorder %v3310_v9, 2 }
 0x11e   : > { %v829_v11 = vxor.u32 2147483648, %v828_v13  ;;  %v2337_v25 = vadd.s32 4294967169, %v1019_v54  ;;  %v834_v29 = vsel %vm3341_vm5, 0, %v832_v56  ;;  %v954_v34 = vmul.u32 %v3293_v35, %v900_v38 }
 0x11f   : > { %v700_v17 = vxor.u32 2147483648, %v695_v51  ;;  %v704_v23 = vsel %vm702_vm3, %v703_v15, %v695_v51  ;;  %v953_v32 = vadd.s32 %v952_v44, %v943_v4  ;;  %vm956_vm11 = vc.u32 %v3355_v42, %v3358_v58 }
 0x120   : > { %v830_v53 = vsel %vm709_vm2, %v829_v11, %v828_v13  ;;  %v1025_v9 = vadd.s32 1, %v2337_v25  ;;  %v3377_v7 = vand.u32 3, %v834_v29  ;;  %v1015_v35 = vand.u32 2147483647, %v3063_v31 }
 0x121   : > { %v701_v36 = vsel %vm699_vm9, %v687_v1, %v700_v17  ;;  %v833_v37 = vsel %vm3341_vm5, %v3054_v24, %v830_v53  ;;  %v957_v43 = vadd.s32 1, %v953_v32  ;;  %v1172_v49 = vand.u32 2139095040, %v3067_v33 }
 0x122   : > { %v705_v5 = vsel %vm698_vm10, %v701_v36, %v704_v23  ;;  %v835_v40 = vmul.f32 %v833_v37, %v833_v37  ;;  %vm1026_vm12 = vcmp.gt.s32.totalorder %v1025_v9, 0  ;;  %vm856_vm13 = vcmp.eq.s32.totalorder %v3377_v7, 2 }
 0x123   : > { %v706_v47 = vsel %vm696_vm8, nan, %v705_v5  ;;  %v958_v60 = vsel %vm956_vm11, %v957_v43, %v953_v32  ;;  %v1027_v41 = vsel %vm1026_vm12, %v1025_v9, 0  ;;  %v1022_v21 = vand.u32 8388607, %v1015_v35 }
 0x124   : > { %v836_v27 = vmul.f32 -0.001358992, %v835_v40  ;;  %v843_v59 = vmul.f32 -0.00019511016, %v835_v40  ;;  %2093 = vst [vmem:[%s3381_s3] sm:$0xff] %v706_v47  ;;  %v959_v12 = vadd.s32 %v958_v60, %v954_v34  ;;  %v1029_v45 = vand.u32 31, %v1027_v41 }
 0x125   : > { %v1169_v55 = vand.u32 2147483647, %v3067_v33  ;;  %vm853_vm14 = vcmp.eq.s32.totalorder %v3377_v7, 0  ;;  %vm852_vm15 = vcmp.lt.s32.totalorder %v3377_v7, 2  ;;  %vm850_vm0 = vweird.f32 %v3054_v24 }
 0x126   : > { %v837_v48 = vadd.f32 0.041655596, %v836_v27  ;;  %v844_v2 = vadd.f32 0.008332121, %v843_v59  ;;  %v960_v19 = vadd.s32 536870912, %v959_v12  ;;  %v3387_v30 = vsub.s32 32, %v1029_v45 }
 0x127   : > { %v1032_v52 = vshll.u32 %v2757_v14, %v1029_v45  ;;  %v1035_v0 = vshll.u32 %v2758_v16, %v1029_v45  ;;  %v1041_v56 = vshll.u32 %v2760_v20, %v1029_v45  ;;  %v1023_v13 = vor.u32 8388608, %v1022_v21 }
 0x128   : > { %v838_v57 = vmul.f32 %v837_v48, %v835_v40  ;;  %v845_v62 = vmul.f32 %v844_v2, %v835_v40  ;;  %v3393_v38 = vshrl.u32 %v960_v19, 30  ;;  %v1033_v63 = vshrl.u32 %v2758_v16, %v3387_v30 }
 0x129   : > { %v1036_v6 = vshrl.u32 %v2759_v18, %v3387_v30  ;;  %v1042_v8 = vshrl.u32 %v2761_v22, %v3387_v30  ;;  %v3406_v4 = vshrl.u32 %v1027_v41, 5  ;;  %v1173_v50 = vshrl.u32 %v1172_v49, 23 }
 0x12a   : > { %v839_v61 = vadd.f32 -0.4999988, %v838_v57  ;;  %v846_v1 = vadd.f32 -0.16666654, %v845_v62  ;;  %v962_v10 = vshll.u32 %v3393_v38, 30  ;;  %v1038_v54 = vshll.u32 %v2759_v18, %v1029_v45 }
 0x12b   : > { %v1039_v11 = vshrl.u32 %v2760_v20, %v3387_v30  ;;  %v1034_v17 = vor.u32 %v1033_v63, %v1032_v52  ;;  %v1044_v23 = vshll.u32 %v2761_v22, %v1029_v45  ;;  %v1045_v25 = vshrl.u32 %v2762_v28, %v3387_v30 }
 0x12c   : > { %v840_v51 = vmul.f32 %v839_v61, %v835_v40  ;;  %v847_v15 = vmul.f32 %v846_v1, %v835_v40  ;;  %v3411_v44 = vsub.s32 %v959_v12, %v962_v10  ;;  %v1037_v32 = vor.u32 %v1036_v6, %v1035_v0 }
 0x12d   : > { %v1043_v34 = vor.u32 %v1042_v8, %v1041_v56  ;;  %v1046_v9 = vor.u32 %v1045_v25, %v1044_v23  ;;  %vm1047_vm2 = vcmp.lt.s32.totalorder %v3406_v4, 1  ;;  %vm863_vm3 = vcmp.lt.s32.totalorder %v3056_v26, 0 }
 0x12e   : > { %v841_v53 = vadd.f32 1.0, %v840_v51  ;;  %v848_v29 = vadd.f32 1.0, %v847_v15  ;;  %vm964_vm1 = vcmp.lt.s32.totalorder %v3411_v44, 0  ;;  %v965_v36 = vsub.s32 0, %v3411_v44 }
 0x12f   : > { %v1040_v43 = vor.u32 %v1039_v11, %v1038_v54  ;;  %vm1050_vm4 = vcmp.lt.s32.totalorder %v3406_v4, 4  ;;  %vm1048_vm5 = vcmp.lt.s32.totalorder %v3406_v4, 2  ;;  %vm1049_vm6 = vcmp.lt.s32.totalorder %v3406_v4, 3 }
 0x130   : > { %v849_v5 = vmul.f32 %v848_v29, %v833_v37  ;;  %v857_v40 = vxor.u32 2147483648, %v841_v53  ;;  %v966_v47 = vsel %vm964_vm1, %v965_v36, %v3411_v44  ;;  %v3424_v27 = vshll.u32 %v1023_v13, 8 }
 0x131   : > { %v967_v41 = vclz %v966_v47  ;;  %v1055_v37 = vsel %vm1047_vm2, %v1034_v17, %v1037_v32  ;;  %v955_v12 = vadd.s32 %v3358_v58, %v3355_v42  ;;  %v1056_v45 = vsel %vm1050_vm4, %v1043_v34, 920167782 }
 0x132   : > { %v854_v59 = vxor.u32 2147483648, %v849_v5  ;;  %v858_v60 = vsel %vm856_vm13, %v857_v40, %v849_v5  ;;  %v1060_v48 = vsel %vm1050_vm4, %v1046_v9, 1326507024  ;;  %v2340_v2 = vadd.s32 4294967169, %v1173_v50 }
 0x133   : > { %v2335_v21 = vadd.s32 4294967294, %v967_v41  ;;  %v1057_v49 = vsel %vm1049_vm6, %v1040_v43, %v1056_v45  ;;  %v1059_v57 = vsel %vm1047_vm2, %v1037_v32, %v1040_v43  ;;  %v985_v58 = vsub.s32 4, %v3393_v38 }
 0x134   : > { %v855_v19 = vsel %vm853_vm14, %v841_v53, %v854_v59  ;;  %v1058_v62 = vsel %vm1048_vm5, %v1055_v37, %v1057_v49  ;;  %v1061_v52 = vsel %vm1049_vm6, %v1043_v34, %v1060_v48  ;;  %v1064_v0 = vand.u32 65535, %v3424_v27 }
 0x135   : > { %v859_v42 = vsel %vm852_vm15, %v855_v19, %v858_v60  ;;  %vm2336_vm7 = vcmp.lt.s32.totalorder %v2335_v21, 0  ;;  %v1065_v56 = vshrl.u32 %v3424_v27, 16  ;;  %v1031_v7 = vshrl.u32 %v2757_v14, %v3387_v30 }
 0x136   : > { %v860_v63 = vsel %vm850_vm0, nan, %v859_v42  ;;  %v970_v61 = vsel %vm2336_vm7, 0, %v2335_v21  ;;  %v1062_v1 = vsel %vm1048_vm5, %v1059_v57, %v1061_v52  ;;  %v1089_v6 = vshrl.u32 %v1058_v62, 16 }
 0x137   : > { %2094 = vst [vmem:[%s3381_s3 + $0x8] sm:$0xff] %v860_v63  ;;  %v971_v8 = vsub.s32 32, %v970_v61  ;;  %v972_v10 = vshll.u32 %v3411_v44, %v970_v61  ;;  %v975_v13 = vsub.s32 4294967266, %v970_v61  ;;  %v1088_v24 = vand.u32 65535, %v1058_v62 }
 0x138   : > { %v3462_v50 = vsel %vm863_vm3, %v985_v58, %v3393_v38  ;;  %v1066_v51 = vand.u32 65535, %v1062_v1  ;;  %v1067_v15 = vshrl.u32 %v1062_v1, 16  ;;  %v1179_v54 = vadd.s32 1, %v2340_v2 }
 0x139   : > { %v973_v11 = vshrl.u32 %v955_v12, %v971_v8  ;;  %v976_v30 = vadd.s32 127, %v975_v13  ;;  %v1052_v23 = vsel %vm1050_vm4, %v1040_v43, 2102212464  ;;  %v1091_v25 = vmul.u32 %v1089_v6, %v1064_v0 }
 0x13a   : > { %v1051_v53 = vsel %vm1047_vm2, %v1031_v7, %v1034_v17  ;;  %v1068_v44 = vmul.u32 %v1066_v51, %v1064_v0  ;;  %v1069_v29 = vmul.u32 %v1067_v15, %v1064_v0  ;;  %v1070_v34 = vmul.u32 %v1066_v51, %v1065_v56 }
 0x13b   : > { %vm3470_vm8 = vcmp.le.f32.partialorder %v861_v39, 0.7853982  ;;  %v974_v36 = vor.u32 %v973_v11, %v972_v10  ;;  %v977_v9 = vshll.u32 %v976_v30, 23  ;;  %v1090_v5 = vmul.u32 %v1088_v24, %v1064_v0 }
 0x13c   : > { %v1092_v40 = vmul.u32 %v1088_v24, %v1065_v56  ;;  %v1053_v43 = vsel %vm1049_vm6, %v1037_v32, %v1052_v23  ;;  %v1071_v47 = vmul.u32 %v1067_v15, %v1065_v56  ;;  %v1072_v59 = vshll.u32 %v1069_v29, 16  ;;  %v3487_v15 = vld [vmem:[%s3059_s26 + $0x10] sm:$0xff] }
 0x13d   : > { %v1074_v60 = vshll.u32 %v1070_v34, 16  ;;  %v978_v17 = vor.u32 4788187, %v977_v9  ;;  %v981_v41 = vcvt.s32.f32 %v974_v36  ;;  %v1093_v37 = vmul.u32 %v1089_v6, %v1065_v56 }
 0x13e   : > { %v1094_v12 = vshll.u32 %v1091_v25, 16  ;;  %v1073_v45 = vshrl.u32 %v1069_v29, 16  ;;  %vm1076_vm9 = vc.u32 %v1068_v44, %v1072_v59  ;;  %v1078_v39 = vadd.s32 %v1072_v59, %v1068_v44 }
 0x13f   : > { %v1096_v48 = vshll.u32 %v1092_v40, 16  ;;  %v979_v2 = vand.u32 2147483647, %v978_v17  ;;  %v1077_v19 = vsel %vm1076_vm9, 1, %v2763_v3  ;;  %v1095_v57 = vshrl.u32 %v1091_v25, 16 }
 0x140   : > { %vm1098_vm10 = vc.u32 %v1090_v5, %v1094_v12  ;;  %v1100_v21 = vadd.s32 %v1094_v12, %v1090_v5  ;;  %v1079_v49 = vadd.s32 %v1077_v19, %v1071_v47  ;;  %vm1080_vm11 = vc.u32 %v1078_v39, %v1074_v60 }
 0x141   : > { %v1099_v32 = vsel %vm1098_vm10, 1, %v2763_v3  ;;  %v982_v42 = vmul.f32 %v981_v41, %v979_v2  ;;  %v1081_v58 = vsel %vm1080_vm11, 1, %v2763_v3  ;;  %v1075_v52 = vshrl.u32 %v1070_v34, 16 }
 0x142   : > { %v1101_v62 = vadd.s32 %v1099_v32, %v1093_v37  ;;  %vm1102_vm12 = vc.u32 %v1100_v21, %v1096_v48  ;;  %v1083_v63 = vadd.s32 %v1081_v58, %v1079_v49  ;;  %vm1180_vm13 = vcmp.gt.s32.totalorder %v1179_v54, 0 }
 0x143   : > { %v1103_v0 = vsel %vm1102_vm12, 1, %v2763_v3  ;;  %v983_v56 = vxor.u32 2147483648, %v982_v42  ;;  %v1097_v61 = vshrl.u32 %v1092_v40, 16  ;;  %v1181_v1 = vsel %vm1180_vm13, %v1179_v54, 0 }
 0x144   : > { %v1105_v7 = vadd.s32 %v1103_v0, %v1101_v62  ;;  %v1054_v6 = vsel %vm1048_vm5, %v1051_v53, %v1053_v43  ;;  %v1084_v8 = vadd.s32 %v1083_v63, %v1073_v45  ;;  %v3482_v10 = vadd.s32 %v1100_v21, %v1096_v48 }
 0x145   : > { %v1183_v13 = vand.u32 31, %v1181_v1  ;;  %v984_v24 = vsel %vm863_vm3, %v983_v56, %v982_v42  ;;  %v1176_v4 = vand.u32 8388607, %v1169_v55  ;;  %v988_v23 = vsel %vm3470_vm8, 0, %v3462_v50 }
 0x146   : > { %v1106_v51 = vadd.s32 %v1105_v7, %v1095_v57  ;;  %v987_v11 = vsel %vm3470_vm8, %v3487_v15, %v984_v24  ;;  %v3492_v30 = vadd.s32 %v1084_v8, %v1075_v52  ;;  %v1108_v53 = vmul.u32 %v3424_v27, %v1054_v6 }
 0x147   : > { %v3496_v54 = vsub.s32 32, %v1183_v13  ;;  %v989_v26 = vmul.f32 %v987_v11, %v987_v11  ;;  %v1186_v44 = vshll.u32 %v2757_v14, %v1183_v13  ;;  %v1189_v34 = vshll.u32 %v2758_v16, %v1183_v13 }
 0x148   : > { %v1107_v25 = vadd.s32 %v1106_v51, %v1097_v61  ;;  %vm1110_vm14 = vc.u32 %v3492_v30, %v3482_v10  ;;  %v1192_v38 = vshll.u32 %v2759_v18, %v1183_v13  ;;  %v1195_v40 = vshll.u32 %v2760_v20, %v1183_v13 }
 0x149   : > { %v1187_v29 = vshrl.u32 %v2758_v16, %v3496_v54  ;;  %v990_v36 = vmul.f32 -0.001358992, %v989_v26  ;;  %v997_v9 = vmul.f32 -0.00019511016, %v989_v26  ;;  %v1190_v50 = vshrl.u32 %v2759_v18, %v3496_v54 }
 0x14a   : > { %v1111_v5 = vadd.s32 1, %v1107_v25  ;;  %v1193_v27 = vshrl.u32 %v2760_v20, %v3496_v54  ;;  %v1196_v43 = vshrl.u32 %v2761_v22, %v3496_v54  ;;  %v3516_v17 = vshrl.u32 %v1181_v1, 5 }
 0x14b   : > { %v991_v47 = vadd.f32 0.041655596, %v990_v36  ;;  %v998_v59 = vadd.f32 0.008332121, %v997_v9  ;;  %v1005_v41 = vand.u32 3, %v988_v23  ;;  %v1177_v12 = vor.u32 8388608, %v1176_v4 }
 0x14c   : > { %v1112_v60 = vsel %vm1110_vm14, %v1111_v5, %v1107_v25  ;;  %v1188_v45 = vor.u32 %v1187_v29, %v1186_v44  ;;  %v3518_v2 = vor.u32 %v1190_v50, %v1189_v34  ;;  %v1198_v19 = vshll.u32 %v2761_v22, %v1183_v13 }
 0x14d   : > { %v1113_v37 = vadd.s32 %v1112_v60, %v1108_v53  ;;  %v992_v39 = vmul.f32 %v991_v47, %v989_v26  ;;  %v999_v48 = vmul.f32 %v998_v59, %v989_v26  ;;  %v1194_v49 = vor.u32 %v1193_v27, %v1192_v38 }
 0x14e   : > { %v1197_v57 = vor.u32 %v1196_v43, %v1195_v40  ;;  %v1199_v32 = vshrl.u32 %v2762_v28, %v3496_v54  ;;  %vm1201_vm15 = vcmp.lt.s32.totalorder %v3516_v17, 1  ;;  %vm1204_vm0 = vcmp.lt.s32.totalorder %v3516_v17, 4 }
 0x14f   : > { %v1114_v21 = vadd.s32 536870912, %v1113_v37  ;;  %v993_v42 = vadd.f32 -0.4999988, %v992_v39  ;;  %v1000_v58 = vadd.f32 -0.16666654, %v999_v48  ;;  %vm1004_vm1 = vweird.f32 %v3487_v15 }
 0x150   : > { %v1200_v52 = vor.u32 %v1199_v32, %v1198_v19  ;;  %vm1203_vm2 = vcmp.lt.s32.totalorder %v3516_v17, 3  ;;  %v3529_v63 = vshll.u32 %v1177_v12, 8  ;;  %vm1006_vm3 = vcmp.lt.s32.totalorder %v1005_v41, 2 }
 0x151   : > { %v3526_v62 = vshrl.u32 %v1114_v21, 30  ;;  %v994_v0 = vmul.f32 %v993_v42, %v989_v26  ;;  %v1001_v56 = vmul.f32 %v1000_v58, %v989_v26  ;;  %vm1007_vm4 = vcmp.eq.s32.totalorder %v1005_v41, 0 }
 0x152   : > { %vm1202_vm5 = vcmp.lt.s32.totalorder %v3516_v17, 2  ;;  %v1209_v7 = vsel %vm1201_vm15, %v1188_v45, %v3518_v2  ;;  %v1210_v1 = vsel %vm1204_vm0, %v1197_v57, 920167782  ;;  %v1213_v24 = vsel %vm1201_vm15, %v3518_v2, %v1194_v49 }
 0x153   : > { %v1116_v61 = vshll.u32 %v3526_v62, 30  ;;  %v995_v6 = vadd.f32 1.0, %v994_v0  ;;  %v1002_v8 = vadd.f32 1.0, %v1001_v56  ;;  %v1211_v13 = vsel %vm1203_vm2, %v1194_v49, %v1210_v1 }
 0x154   : > { %vm1010_vm6 = vcmp.eq.s32.totalorder %v1005_v41, 2  ;;  %v1214_v4 = vsel %vm1204_vm0, %v1200_v52, 1326507024  ;;  %v1218_v23 = vand.u32 65535, %v3529_v63  ;;  %v1212_v53 = vsel %vm1202_vm5, %v1209_v7, %v1211_v13 }
 0x155   : > { %v1117_v51 = vsub.s32 %v1113_v37, %v1116_v61  ;;  %v1003_v26 = vmul.f32 %v1002_v8, %v987_v11  ;;  %v1011_v25 = vxor.u32 2147483648, %v995_v6  ;;  %v1215_v44 = vsel %vm1203_vm2, %v1197_v57, %v1214_v4 }
 0x156   : > { %v1216_v34 = vsel %vm1202_vm5, %v1213_v24, %v1215_v44  ;;  %v1219_v36 = vshrl.u32 %v3529_v63, 16  ;;  %v1185_v11 = vshrl.u32 %v2757_v14, %v3496_v54  ;;  %v1242_v40 = vand.u32 65535, %v1212_v53 }
 0x157   : > { %vm1118_vm7 = vcmp.lt.s32.totalorder %v1117_v51, 0  ;;  %v1119_v29 = vsub.s32 0, %v1117_v51  ;;  %v1008_v9 = vxor.u32 2147483648, %v1003_v26  ;;  %v1012_v5 = vsel %vm1010_vm6, %v1011_v25, %v1003_v26 }
 0x158   : > { %v1220_v50 = vand.u32 65535, %v1216_v34  ;;  %v1221_v38 = vshrl.u32 %v1216_v34, 16  ;;  %v1243_v43 = vshrl.u32 %v1212_v53, 16  ;;  %v1109_v21 = vadd.s32 %v3482_v10, %v3492_v30 }
 0x159   : > { %v1120_v27 = vsel %vm1118_vm7, %v1119_v29, %v1117_v51  ;;  %v1009_v47 = vsel %vm1007_vm4, %v995_v6, %v1008_v9  ;;  %v1205_v32 = vsel %vm1201_vm15, %v1185_v11, %v1188_v45  ;;  %v1206_v42 = vsel %vm1204_vm0, %v1194_v49, 2102212464 }
 0x15a   : > { %v1121_v59 = vclz %v1120_v27  ;;  %v1222_v60 = vmul.u32 %v1220_v50, %v1218_v23  ;;  %v1223_v37 = vmul.u32 %v1221_v38, %v1218_v23  ;;  %v1013_v12 = vsel %vm1006_vm3, %v1009_v47, %v1012_v5  ;;  %v3575_v27 = vld [vmem:[%s3059_s26 + $0x28] sm:$0xff] }
 0x15b   : > { %v1224_v39 = vmul.u32 %v1220_v50, %v1219_v36  ;;  %v1245_v48 = vmul.u32 %v1243_v43, %v1218_v23  ;;  %v1014_v19 = vsel %vm1004_vm1, nan, %v1013_v12  ;;  %v1225_v58 = vmul.u32 %v1221_v38, %v1219_v36  ;;  %v3579_v12 = vld [vmem:[%s3059_s26 + $0x18] sm:$0xff] }
 0x15c   : > { %v2338_v57 = vadd.s32 4294967294, %v1121_v59  ;;  %v1226_v54 = vshll.u32 %v1223_v37, 16  ;;  %2095 = vst [vmem:[%s3381_s3 + $0x10] sm:$0xff] %v1014_v19  ;;  %v1244_v41 = vmul.u32 %v1242_v40, %v1218_v23  ;;  %v1246_v0 = vmul.u32 %v1242_v40, %v1219_v36 }
 0x15d   : > { %v1228_v52 = vshll.u32 %v1224_v39, 16  ;;  %v1248_v10 = vshll.u32 %v1245_v48, 16  ;;  %v1207_v45 = vsel %vm1203_vm2, %v3518_v2, %v1206_v42  ;;  %v1227_v49 = vshrl.u32 %v1223_v37, 16 }
 0x15e   : > { %vm2339_vm8 = vcmp.lt.s32.totalorder %v2338_v57, 0  ;;  %vm1230_vm9 = vc.u32 %v1222_v60, %v1226_v54  ;;  %v1232_v61 = vadd.s32 %v1226_v54, %v1222_v60  ;;  %v1247_v8 = vmul.u32 %v1243_v43, %v1219_v36 }
 0x15f   : > { %v1124_v15 = vsel %vm2339_vm8, 0, %v2338_v57  ;;  %v1231_v56 = vsel %vm1230_vm9, 1, %v2763_v3  ;;  %v1250_v23 = vshll.u32 %v1246_v0, 16  ;;  %v1139_v26 = vsub.s32 4, %v3526_v62 }
 0x160   : > { %v1125_v30 = vsub.s32 32, %v1124_v15  ;;  %v1126_v7 = vshll.u32 %v1117_v51, %v1124_v15  ;;  %v1129_v1 = vsub.s32 4294967266, %v1124_v15  ;;  %v1233_v6 = vadd.s32 %v1231_v56, %v1225_v58 }
 0x161   : > { %vm1234_vm10 = vc.u32 %v1232_v61, %v1228_v52  ;;  %vm1252_vm11 = vc.u32 %v1244_v41, %v1248_v10  ;;  %v1254_v51 = vadd.s32 %v1248_v10, %v1244_v41  ;;  %v1229_v29 = vshrl.u32 %v1224_v39, 16 }
 0x162   : > { %v1127_v13 = vshrl.u32 %v1109_v21, %v1125_v30  ;;  %v1130_v24 = vadd.s32 127, %v1129_v1  ;;  %v1235_v4 = vsel %vm1234_vm10, 1, %v2763_v3  ;;  %v1253_v2 = vsel %vm1252_vm11, 1, %v2763_v3 }
 0x163   : > { %v1237_v25 = vadd.s32 %v1235_v4, %v1233_v6  ;;  %v1249_v9 = vshrl.u32 %v1245_v48, 16  ;;  %v1255_v36 = vadd.s32 %v1253_v2, %v1247_v8  ;;  %vm1256_vm12 = vc.u32 %v1254_v51, %v1250_v23 }
 0x164   : > { %v1128_v53 = vor.u32 %v1127_v13, %v1126_v7  ;;  %v1131_v44 = vshll.u32 %v1130_v24, 23  ;;  %v1257_v38 = vsel %vm1256_vm12, 1, %v2763_v3  ;;  %v1326_v11 = vand.u32 2139095040, %v3575_v27  ;;  %v3601_v7 = vld [vmem:[%s3059_s26 + $0x30] sm:$0xff] }
 0x165   : > { %v1238_v34 = vadd.s32 %v1237_v25, %v1227_v49  ;;  %v1251_v40 = vshrl.u32 %v1246_v0, 16  ;;  %v1259_v43 = vadd.s32 %v1257_v38, %v1255_v36  ;;  %v1258_v60 = vadd.s32 %v1254_v51, %v1250_v23 }
 0x166   : > { %v1132_v5 = vor.u32 4788187, %v1131_v44  ;;  %v1135_v50 = vcvt.s32.f32 %v1128_v53  ;;  %v1327_v37 = vshrl.u32 %v1326_v11, 23  ;;  %vm1017_vm13 = vcmp.lt.s32.totalorder %v3579_v12, 0 }
 0x167   : > { %v1239_v59 = vadd.s32 %v1238_v34, %v1229_v29  ;;  %v1208_v39 = vsel %vm1202_vm5, %v1205_v32, %v1207_v45  ;;  %v1260_v48 = vadd.s32 %v1259_v43, %v1249_v9  ;;  %v1140_v21 = vsel %vm1017_vm13, %v1139_v26, %v3526_v62 }
 0x168   : > { %v1133_v47 = vand.u32 2147483647, %v1132_v5  ;;  %v1323_v57 = vand.u32 2147483647, %v3575_v27  ;;  %v2343_v54 = vadd.s32 4294967169, %v1327_v37  ;;  %v1262_v52 = vmul.u32 %v3529_v63, %v1208_v39 }
 0x169   : > { %vm1016_vm14 = vcmp.le.f32.partialorder %v1015_v35, 0.7853982  ;;  %v1261_v42 = vadd.s32 %v1260_v48, %v1251_v40  ;;  %vm1264_vm15 = vc.u32 %v1239_v59, %v1258_v60  ;;  %v3598_v10 = vadd.s32 %v1258_v60, %v1239_v59 }
 0x16a   : > { %v1136_v19 = vmul.f32 %v1135_v50, %v1133_v47  ;;  %v1333_v41 = vadd.s32 1, %v2343_v54  ;;  %v1142_v0 = vsel %vm1016_vm14, 0, %v1140_v21  ;;  %v1330_v15 = vand.u32 8388607, %v1323_v57 }
 0x16b   : > { %v1265_v17 = vadd.s32 1, %v1261_v42  ;;  %v3596_v61 = vand.u32 3, %v1142_v0  ;;  %v1477_v1 = vand.u32 2147483647, %v3601_v7  ;;  %v1480_v45 = vand.u32 2139095040, %v3601_v7 }
 0x16c   : > { %v1137_v58 = vxor.u32 2147483648, %v1136_v19  ;;  %vm1334_vm0 = vcmp.gt.s32.totalorder %v1333_v41, 0  ;;  %v1331_v13 = vor.u32 8388608, %v1330_v15  ;;  %vm1158_vm5 = vweird.f32 %v3579_v12 }
 0x16d   : > { %v1266_v56 = vsel %vm1264_vm15, %v1265_v17, %v1261_v42  ;;  %v1335_v31 = vsel %vm1334_vm0, %v1333_v41, 0  ;;  %vm1164_vm1 = vcmp.eq.s32.totalorder %v3596_v61, 2  ;;  %v1481_v38 = vshrl.u32 %v1480_v45, 23 }
 0x16e   : > { %v1138_v32 = vsel %vm1017_vm13, %v1137_v58, %v1136_v19  ;;  %v1267_v63 = vadd.s32 %v1266_v56, %v1262_v52  ;;  %v1337_v30 = vand.u32 31, %v1335_v31  ;;  %v3605_v24 = vshrl.u32 %v1335_v31, 5  ;;  %v3643_v52 = vld [vmem:[%s3059_s26 + $0x20] sm:$0xff] }
 0x16f   : > { %v3592_v62 = vsel %vm1016_vm14, %v3579_v12, %v1138_v32  ;;  %vm1161_vm2 = vcmp.eq.s32.totalorder %v3596_v61, 0  ;;  %v3629_v43 = vshll.u32 %v1331_v13, 8  ;;  %vm1160_vm4 = vcmp.lt.s32.totalorder %v3596_v61, 2 }
 0x170   : > { %v1143_v35 = vmul.f32 %v3592_v62, %v3592_v62  ;;  %v1268_v8 = vadd.s32 536870912, %v1267_v63  ;;  %v3607_v4 = vsub.s32 32, %v1337_v30  ;;  %v1340_v23 = vshll.u32 %v2757_v14, %v1337_v30 }
 0x171   : > { %v1343_v26 = vshll.u32 %v2758_v16, %v1337_v30  ;;  %v1346_v44 = vshll.u32 %v2759_v18, %v1337_v30  ;;  %v1349_v9 = vshll.u32 %v2760_v20, %v1337_v30  ;;  %vm1355_vm3 = vcmp.lt.s32.totalorder %v3605_v24, 1 }
 0x172   : > { %v1144_v49 = vmul.f32 -0.001358992, %v1143_v35  ;;  %v1151_v6 = vmul.f32 -0.00019511016, %v1143_v35  ;;  %v3611_v53 = vshrl.u32 %v1268_v8, 30  ;;  %v1341_v29 = vshrl.u32 %v2758_v16, %v3607_v4 }
 0x173   : > { %v1344_v2 = vshrl.u32 %v2759_v18, %v3607_v4  ;;  %v1347_v34 = vshrl.u32 %v2760_v20, %v3607_v4  ;;  %v1350_v40 = vshrl.u32 %v2761_v22, %v3607_v4  ;;  %v1352_v19 = vshll.u32 %v2761_v22, %v1337_v30 }
 0x174   : > { %v1145_v25 = vadd.f32 0.041655596, %v1144_v49  ;;  %v1152_v51 = vadd.f32 0.008332121, %v1151_v6  ;;  %v1270_v50 = vshll.u32 %v3611_v53, 30  ;;  %v3624_v11 = vor.u32 %v1341_v29, %v1340_v23 }
 0x175   : > { %v3634_v37 = vor.u32 %v1344_v2, %v1343_v26  ;;  %v1348_v39 = vor.u32 %v1347_v34, %v1346_v44  ;;  %v1351_v48 = vor.u32 %v1350_v40, %v1349_v9  ;;  %v1353_v21 = vshrl.u32 %v2762_v28, %v3607_v4 }
 0x176   : > { %v1146_v36 = vmul.f32 %v1145_v25, %v1143_v35  ;;  %v1153_v5 = vmul.f32 %v1152_v51, %v1143_v35  ;;  %v3632_v60 = vsub.s32 %v1267_v63, %v1270_v50  ;;  %vm1171_vm7 = vcmp.lt.s32.totalorder %v3643_v52, 0 }
 0x177   : > { %v1354_v41 = vor.u32 %v1353_v21, %v1352_v19  ;;  %vm1357_vm8 = vcmp.lt.s32.totalorder %v3605_v24, 3  ;;  %vm1358_vm9 = vcmp.lt.s32.totalorder %v3605_v24, 4  ;;  %v2346_v0 = vadd.s32 4294967169, %v1481_v38 }
 0x178   : > { %v1147_v47 = vadd.f32 -0.4999988, %v1146_v36  ;;  %v1154_v59 = vadd.f32 -0.16666654, %v1153_v5  ;;  %vm1272_vm6 = vcmp.lt.s32.totalorder %v3632_v60, 0  ;;  %v1273_v58 = vsub.s32 0, %v3632_v60 }
 0x179   : > { %vm1356_vm10 = vcmp.lt.s32.totalorder %v3605_v24, 2  ;;  %v1363_v31 = vsel %vm1355_vm3, %v3624_v11, %v3634_v37  ;;  %v3658_v63 = vand.u32 8388607, %v1477_v1  ;;  %v1372_v6 = vand.u32 65535, %v3629_v43 }
 0x17a   : > { %v1148_v54 = vmul.f32 %v1147_v47, %v1143_v35  ;;  %v1155_v42 = vmul.f32 %v1154_v59, %v1143_v35  ;;  %v1274_v15 = vsel %vm1272_vm6, %v1273_v58, %v3632_v60  ;;  %v1364_v35 = vsel %vm1358_vm9, %v1351_v48, 920167782 }
 0x17b   : > { %v1275_v56 = vclz %v1274_v15  ;;  %v1365_v49 = vsel %vm1357_vm8, %v1348_v39, %v1364_v35  ;;  %vm3666_vm11 = vcmp.le.f32.partialorder %v1169_v55, 0.7853982  ;;  %v1487_v26 = vadd.s32 1, %v2346_v0 }
 0x17c   : > { %v1149_v17 = vadd.f32 1.0, %v1148_v54  ;;  %v1156_v32 = vadd.f32 1.0, %v1155_v42  ;;  %v1366_v23 = vsel %vm1356_vm10, %v1363_v31, %v1365_v49  ;;  %v1293_v44 = vsub.s32 4, %v3611_v53 }
 0x17d   : > { %v2341_v13 = vadd.s32 4294967294, %v1275_v56  ;;  %v1368_v33 = vsel %vm1358_vm9, %v1354_v41, 1326507024  ;;  %v1373_v29 = vshrl.u32 %v3629_v43, 16  ;;  %v1396_v2 = vand.u32 65535, %v1366_v23 }
 0x17e   : > { %v1157_v30 = vmul.f32 %v1156_v32, %v3592_v62  ;;  %v1165_v45 = vxor.u32 2147483648, %v1149_v17  ;;  %v1367_v62 = vsel %vm1355_vm3, %v3634_v37, %v1348_v39  ;;  %v1369_v55 = vsel %vm1357_vm8, %v1351_v48, %v1368_v33 }
 0x17f   : > { %vm2342_vm12 = vcmp.lt.s32.totalorder %v2341_v13, 0  ;;  %v1370_v36 = vsel %vm1356_vm10, %v1367_v62, %v1369_v55  ;;  %v1397_v5 = vshrl.u32 %v1366_v23, 16  ;;  %v1294_v48 = vsel %vm1171_vm7, %v1293_v44, %v3611_v53 }
 0x180   : > { %v1162_v25 = vxor.u32 2147483648, %v1157_v30  ;;  %v1166_v51 = vsel %vm1164_vm1, %v1165_v45, %v1157_v30  ;;  %v1278_v9 = vsel %vm2342_vm12, 0, %v2341_v13  ;;  %v1339_v19 = vshrl.u32 %v2757_v14, %v3607_v4 }
 0x181   : > { %v1279_v38 = vsub.s32 32, %v1278_v9  ;;  %v1280_v40 = vshll.u32 %v3632_v60, %v1278_v9  ;;  %v1283_v47 = vsub.s32 4294967266, %v1278_v9  ;;  %vm1488_vm13 = vcmp.gt.s32.totalorder %v1487_v26, 0 }
 0x182   : > { %v1163_v34 = vsel %vm1161_vm2, %v1149_v17, %v1162_v25  ;;  %v1374_v61 = vand.u32 65535, %v1370_v36  ;;  %v1375_v42 = vshrl.u32 %v1370_v36, 16  ;;  %v1360_v60 = vsel %vm1358_vm9, %v1348_v39, 2102212464 }
 0x183   : > { %v1167_v50 = vsel %vm1160_vm4, %v1163_v34, %v1166_v51  ;;  %v1281_v21 = vshrl.u32 %v3598_v10, %v1279_v38  ;;  %v1284_v54 = vadd.s32 127, %v1283_v47  ;;  %v1398_v58 = vmul.u32 %v1396_v2, %v1372_v6 }
 0x184   : > { %v1168_v59 = vsel %vm1158_vm5, nan, %v1167_v50  ;;  %v1399_v12 = vmul.u32 %v1397_v5, %v1372_v6  ;;  %v1400_v41 = vmul.u32 %v1396_v2, %v1373_v29  ;;  %v1376_v32 = vmul.u32 %v1374_v61, %v1372_v6 }
 0x185   : > { %2096 = vst [vmem:[%s3381_s3 + $0x18] sm:$0xff] %v1168_v59  ;;  %v1282_v0 = vor.u32 %v1281_v21, %v1280_v40  ;;  %v1285_v17 = vshll.u32 %v1284_v54, 23  ;;  %v1377_v53 = vmul.u32 %v1375_v42, %v1372_v6  ;;  %v1296_v4 = vsel %vm3666_vm11, 0, %v1294_v48 }
 0x186   : > { %v1378_v15 = vmul.u32 %v1374_v61, %v1373_v29  ;;  %v1401_v56 = vmul.u32 %v1397_v5, %v1373_v29  ;;  %v1402_v10 = vshll.u32 %v1399_v12, 16  ;;  %v1379_v30 = vmul.u32 %v1375_v42, %v1373_v29 }
 0x187   : > { %v1286_v31 = vor.u32 4788187, %v1285_v17  ;;  %v1289_v35 = vcvt.s32.f32 %v1282_v0  ;;  %v1380_v45 = vshll.u32 %v1377_v53, 16  ;;  %v1359_v39 = vsel %vm1355_vm3, %v1339_v19, %v3624_v11 }
 0x188   : > { %v1361_v49 = vsel %vm1357_vm8, %v3634_v37, %v1360_v60  ;;  %v1382_v13 = vshll.u32 %v1378_v15, 16  ;;  %v1404_v6 = vshll.u32 %v1400_v41, 16  ;;  %vm1406_vm15 = vc.u32 %v1398_v58, %v1402_v10 }
 0x189   : > { %v1287_v23 = vand.u32 2147483647, %v1286_v31  ;;  %vm1384_vm14 = vc.u32 %v1376_v32, %v1380_v45  ;;  %v1386_v62 = vadd.s32 %v1380_v45, %v1376_v32  ;;  %v1381_v25 = vshrl.u32 %v1377_v53, 16 }
 0x18a   : > { %v1385_v51 = vsel %vm1384_vm14, 1, %v2763_v3  ;;  %v1407_v44 = vsel %vm1406_vm15, 1, %v2763_v3  ;;  %v1408_v33 = vadd.s32 %v1402_v10, %v1398_v58  ;;  %v1403_v34 = vshrl.u32 %v1399_v12, 16 }
 0x18b   : > { %v1290_v55 = vmul.f32 %v1289_v35, %v1287_v23  ;;  %v1387_v29 = vadd.s32 %v1385_v51, %v1379_v30  ;;  %vm1388_vm0 = vc.u32 %v1386_v62, %v1382_v13  ;;  %v1409_v11 = vadd.s32 %v1407_v44, %v1401_v56 }
 0x18c   : > { %v1389_v2 = vsel %vm1388_vm0, 1, %v2763_v3  ;;  %vm1410_vm1 = vc.u32 %v1408_v33, %v1404_v6  ;;  %v1489_v37 = vsel %vm1488_vm13, %v1487_v26, 0  ;;  %v1383_v36 = vshrl.u32 %v1378_v15, 16 }
 0x18d   : > { %v1291_v9 = vxor.u32 2147483648, %v1290_v55  ;;  %v1391_v5 = vadd.s32 %v1389_v2, %v1387_v29  ;;  %v1411_v50 = vsel %vm1410_vm1, 1, %v2763_v3  ;;  %v1362_v38 = vsel %vm1356_vm10, %v1359_v39, %v1361_v49 }
 0x18e   : > { %v1405_v40 = vshrl.u32 %v1400_v41, 16  ;;  %v1413_v47 = vadd.s32 %v1411_v50, %v1409_v11  ;;  %v1491_v59 = vand.u32 31, %v1489_v37  ;;  %v3718_v21 = vadd.s32 %v1408_v33, %v1404_v6 }
 0x18f   : > { %v1292_v48 = vsel %vm1171_vm7, %v1291_v9, %v1290_v55  ;;  %v1392_v19 = vadd.s32 %v1391_v5, %v1381_v25  ;;  %v1485_v54 = vor.u32 8388608, %v3658_v63  ;;  %v3724_v42 = vshrl.u32 %v1489_v37, 5 }
 0x190   : > { %v1295_v26 = vsel %vm3666_vm11, %v3643_v52, %v1292_v48  ;;  %v1414_v61 = vadd.s32 %v1413_v47, %v1403_v34  ;;  %v3726_v24 = vsub.s32 32, %v1491_v59  ;;  %v3728_v58 = vand.u32 3, %v1296_v4 }
 0x191   : > { %v1297_v60 = vmul.f32 %v1295_v26, %v1295_v26  ;;  %v3730_v12 = vadd.s32 %v1392_v19, %v1383_v36  ;;  %v1416_v41 = vmul.u32 %v3629_v43, %v1362_v38  ;;  %v1494_v17 = vshll.u32 %v2757_v14, %v1491_v59 }
 0x192   : > { %v1415_v0 = vadd.s32 %v1414_v61, %v1405_v40  ;;  %v1495_v63 = vshrl.u32 %v2758_v16, %v3726_v24  ;;  %v1497_v8 = vshll.u32 %v2758_v16, %v1491_v59  ;;  %v1498_v4 = vshrl.u32 %v2759_v18, %v3726_v24 }
 0x193   : > { %v1298_v32 = vmul.f32 -0.001358992, %v1297_v60  ;;  %v1305_v53 = vmul.f32 -0.00019511016, %v1297_v60  ;;  %vm1418_vm2 = vc.u32 %v3730_v12, %v3718_v21  ;;  %v1500_v56 = vshll.u32 %v2759_v18, %v1491_v59 }
 0x194   : > { %v1419_v15 = vadd.s32 1, %v1415_v0  ;;  %v1501_v43 = vshrl.u32 %v2760_v20, %v3726_v24  ;;  %vm1509_vm3 = vcmp.lt.s32.totalorder %v3724_v42, 1  ;;  %v1503_v35 = vshll.u32 %v2760_v20, %v1491_v59 }
 0x195   : > { %v1299_v10 = vadd.f32 0.041655596, %v1298_v32  ;;  %v1306_v31 = vadd.f32 0.008332121, %v1305_v53  ;;  %v1504_v30 = vshrl.u32 %v2761_v22, %v3726_v24  ;;  %v3748_v39 = vor.u32 %v1495_v63, %v1494_v17 }
 0x196   : > { %v1420_v45 = vsel %vm1418_vm2, %v1419_v15, %v1415_v0  ;;  %v1506_v49 = vshll.u32 %v2761_v22, %v1491_v59  ;;  %v1507_v13 = vshrl.u32 %v2762_v28, %v3726_v24  ;;  %v3753_v25 = vor.u32 %v1498_v4, %v1497_v8 }
 0x197   : > { %v1300_v6 = vmul.f32 %v1299_v10, %v1297_v60  ;;  %v1307_v23 = vmul.f32 %v1306_v31, %v1297_v60  ;;  %v1421_v62 = vadd.s32 %v1420_v45, %v1416_v41  ;;  %v3755_v51 = vor.u32 %v1501_v43, %v1500_v56 }
 0x198   : > { %v1505_v44 = vor.u32 %v1504_v30, %v1503_v35  ;;  %v1508_v33 = vor.u32 %v1507_v13, %v1506_v49  ;;  %vm1511_vm4 = vcmp.lt.s32.totalorder %v3724_v42, 3  ;;  %vm1512_vm5 = vcmp.lt.s32.totalorder %v3724_v42, 4 }
 0x199   : > { %v1301_v55 = vadd.f32 -0.4999988, %v1300_v6  ;;  %v1308_v29 = vadd.f32 -0.16666654, %v1307_v23  ;;  %v1422_v11 = vadd.s32 536870912, %v1421_v62  ;;  %vm1510_vm6 = vcmp.lt.s32.totalorder %v3724_v42, 2 }
 0x19a   : > { %v1518_v2 = vsel %vm1512_vm5, %v1505_v44, 920167782  ;;  %v3762_v34 = vshll.u32 %v1485_v54, 8  ;;  %v1517_v5 = vsel %vm1509_vm3, %v3748_v39, %v3753_v25  ;;  %vm1314_vm7 = vcmp.lt.s32.totalorder %v3728_v58, 2 }
 0x19b   : > { %v1302_v37 = vmul.f32 %v1301_v55, %v1297_v60  ;;  %v1309_v9 = vmul.f32 %v1308_v29, %v1297_v60  ;;  %v3764_v36 = vshrl.u32 %v1422_v11, 30  ;;  %v1519_v50 = vsel %vm1511_vm4, %v3755_v51, %v1518_v2 }
 0x19c   : > { %v1522_v38 = vsel %vm1512_vm5, %v1508_v33, 1326507024  ;;  %v1521_v48 = vsel %vm1509_vm3, %v3753_v25, %v3755_v51  ;;  %vm1318_vm8 = vcmp.eq.s32.totalorder %v3728_v58, 2  ;;  %v1520_v19 = vsel %vm1510_vm6, %v1517_v5, %v1519_v50 }
 0x19d   : > { %v1303_v40 = vadd.f32 1.0, %v1302_v37  ;;  %v1310_v47 = vadd.f32 1.0, %v1309_v9  ;;  %v1424_v59 = vshll.u32 %v3764_v36, 30  ;;  %v1523_v54 = vsel %vm1511_vm4, %v1505_v44, %v1522_v38 }
 0x19e   : > { %v1526_v61 = vand.u32 65535, %v3762_v34  ;;  %vm1315_vm9 = vcmp.eq.s32.totalorder %v3728_v58, 0  ;;  %v1524_v17 = vsel %vm1510_vm6, %v1521_v48, %v1523_v54  ;;  %v1527_v63 = vshrl.u32 %v3762_v34, 16 }
 0x19f   : > { %v1311_v60 = vmul.f32 %v1310_v47, %v1295_v26  ;;  %v1319_v41 = vxor.u32 2147483648, %v1303_v40  ;;  %v1425_v0 = vsub.s32 %v1421_v62, %v1424_v59  ;;  %v1550_v8 = vand.u32 65535, %v1520_v19 }
 0x1a0   : > { %v1551_v32 = vshrl.u32 %v1520_v19, 16  ;;  %vm1312_vm11 = vweird.f32 %v3643_v52  ;;  %v1528_v56 = vand.u32 65535, %v1524_v17  ;;  %v1529_v26 = vshrl.u32 %v1524_v17, 16 }
 0x1a1   : > { %v1316_v53 = vxor.u32 2147483648, %v1311_v60  ;;  %v1320_v4 = vsel %vm1318_vm8, %v1319_v41, %v1311_v60  ;;  %vm1426_vm10 = vcmp.lt.s32.totalorder %v1425_v0, 0  ;;  %v1427_v15 = vsub.s32 0, %v1425_v0 }
 0x1a2   : > { %v3792_v43 = vmul.u32 %v1551_v32, %v1526_v61  ;;  %v1493_v35 = vshrl.u32 %v2757_v14, %v3726_v24  ;;  %v1530_v49 = vmul.u32 %v1528_v56, %v1526_v61  ;;  %v1531_v13 = vmul.u32 %v1529_v26, %v1526_v61 }
 0x1a3   : > { %v1317_v10 = vsel %vm1315_vm9, %v1303_v40, %v1316_v53  ;;  %v1428_v31 = vsel %vm1426_vm10, %v1427_v15, %v1425_v0  ;;  %v1532_v23 = vmul.u32 %v1528_v56, %v1527_v63  ;;  %v1552_v62 = vmul.u32 %v1550_v8, %v1526_v61 }
 0x1a4   : > { %v1321_v30 = vsel %vm1314_vm7, %v1317_v10, %v1320_v4  ;;  %v1429_v45 = vclz %v1428_v31  ;;  %v1556_v52 = vshll.u32 %v3792_v43, 16  ;;  %v1534_v33 = vshll.u32 %v1531_v13, 16 }
 0x1a5   : > { %v1322_v6 = vsel %vm1312_vm11, nan, %v1321_v30  ;;  %v1417_v55 = vadd.s32 %v3718_v21, %v3730_v12  ;;  %v1533_v29 = vmul.u32 %v1529_v26, %v1527_v63  ;;  %v1536_v11 = vshll.u32 %v1532_v23, 16 }
 0x1a6   : > { %v2344_v44 = vadd.s32 4294967294, %v1429_v45  ;;  %2097 = vst [vmem:[%s3381_s3 + $0x20] sm:$0xff] %v1322_v6  ;;  %v1554_v24 = vmul.u32 %v1550_v8, %v1527_v63  ;;  %vm1325_vm12 = vcmp.lt.s32.totalorder %v3575_v27, 0  ;;  %v1513_v58 = vsel %vm1509_vm3, %v1493_v35, %v3748_v39 }
 0x1a7   : > { %vm1538_vm14 = vc.u32 %v1530_v49, %v1534_v33  ;;  %v1555_v2 = vmul.u32 %v1551_v32, %v1527_v63  ;;  %v1540_v5 = vadd.s32 %v1534_v33, %v1530_v49  ;;  %vm1560_vm15 = vc.u32 %v1552_v62, %v1556_v52 }
 0x1a8   : > { %vm2345_vm13 = vcmp.lt.s32.totalorder %v2344_v44, 0  ;;  %v1539_v9 = vsel %vm1538_vm14, 1, %v2763_v3  ;;  %v1514_v12 = vsel %vm1512_vm5, %v3755_v51, 2102212464  ;;  %v1535_v40 = vshrl.u32 %v1531_v13, 16  ;;  %v3814_v51 = vld [vmem:[%s3059_s26 + $0x38] sm:$0xff] }
 0x1a9   : > { %v1432_v37 = vsel %vm2345_vm13, 0, %v2344_v44  ;;  %v1541_v47 = vadd.s32 %v1539_v9, %v1533_v29  ;;  %vm1542_vm0 = vc.u32 %v1540_v5, %v1536_v11  ;;  %v1558_v59 = vshll.u32 %v1554_v24, 16 }
 0x1aa   : > { %v1433_v50 = vsub.s32 32, %v1432_v37  ;;  %v1434_v38 = vshll.u32 %v1425_v0, %v1432_v37  ;;  %v1437_v21 = vsub.s32 4294967266, %v1432_v37  ;;  %v1543_v19 = vsel %vm1542_vm0, 1, %v2763_v3 }
 0x1ab   : > { %v1561_v54 = vsel %vm1560_vm15, 1, %v2763_v3  ;;  %v1447_v61 = vsub.s32 4, %v3764_v36  ;;  %v1545_v60 = vadd.s32 %v1543_v19, %v1541_v47  ;;  %v1562_v41 = vadd.s32 %v1556_v52, %v1552_v62 }
 0x1ac   : > { %v1435_v39 = vshrl.u32 %v1417_v55, %v1433_v50  ;;  %v1438_v48 = vadd.s32 127, %v1437_v21  ;;  %v1563_v0 = vadd.s32 %v1561_v54, %v1555_v2  ;;  %v1537_v8 = vshrl.u32 %v1532_v23, 16 }
 0x1ad   : > { %v1634_v32 = vand.u32 2139095040, %v3814_v51  ;;  %v1515_v53 = vsel %vm1511_vm4, %v3753_v25, %v1514_v12  ;;  %v1546_v4 = vadd.s32 %v1545_v60, %v1535_v40  ;;  %v1557_v15 = vshrl.u32 %v3792_v43, 16 }
 0x1ae   : > { %v1436_v17 = vor.u32 %v1435_v39, %v1434_v38  ;;  %v1439_v63 = vshll.u32 %v1438_v48, 23  ;;  %vm1564_vm1 = vc.u32 %v1562_v41, %v1558_v59  ;;  %v1448_v35 = vsel %vm1325_vm12, %v1447_v61, %v3764_v36  ;;  %v3851_v38 = vld [vmem:[%s3059_s26 + $0x40] sm:$0xff] }
 0x1af   : > { %v1565_v10 = vsel %vm1564_vm1, 1, %v2763_v3  ;;  %v1635_v31 = vshrl.u32 %v1634_v32, 23  ;;  %v1559_v30 = vshrl.u32 %v1554_v24, 16  ;;  %v3825_v13 = vadd.s32 %v1546_v4, %v1537_v8 }
 0x1b0   : > { %v1440_v56 = vor.u32 4788187, %v1439_v63  ;;  %v1443_v26 = vcvt.s32.f32 %v1436_v17  ;;  %v1567_v45 = vadd.s32 %v1565_v10, %v1563_v0  ;;  %v3827_v6 = vadd.s32 %v1562_v41, %v1558_v59 }
 0x1b1   : > { %v2349_v25 = vadd.s32 4294967169, %v1635_v31  ;;  %v1516_v43 = vsel %vm1510_vm6, %v1513_v58, %v1515_v53  ;;  %v1631_v62 = vand.u32 2147483647, %v3814_v51  ;;  %vm1324_vm2 = vcmp.le.f32.partialorder %v1323_v57, 0.7853982 }
 0x1b2   : > { %v1441_v49 = vand.u32 2147483647, %v1440_v56  ;;  %v1568_v23 = vadd.s32 %v1567_v45, %v1557_v15  ;;  %v1450_v36 = vsel %vm1324_vm2, 0, %v1448_v35  ;;  %v1570_v29 = vmul.u32 %v3762_v34, %v1516_v43 }
 0x1b3   : > { %v1641_v44 = vadd.s32 1, %v2349_v25  ;;  %vm1572_vm3 = vc.u32 %v3825_v13, %v3827_v6  ;;  %v1638_v11 = vand.u32 8388607, %v1631_v62  ;;  %v3844_v37 = vand.u32 3, %v1450_v36 }
 0x1b4   : > { %v1444_v52 = vmul.f32 %v1443_v26, %v1441_v49  ;;  %v1569_v33 = vadd.s32 %v1568_v23, %v1559_v30  ;;  %v1785_v21 = vand.u32 2147483647, %v3851_v38  ;;  %v1788_v59 = vand.u32 2139095040, %v3851_v38 }
 0x1b5   : > { %vm1642_vm4 = vcmp.gt.s32.totalorder %v1641_v44, 0  ;;  %v1639_v12 = vor.u32 8388608, %v1638_v11  ;;  %vm1472_vm5 = vcmp.eq.s32.totalorder %v3844_v37, 2  ;;  %vm1469_vm6 = vcmp.eq.s32.totalorder %v3844_v37, 0 }
 0x1b6   : > { %v1445_v55 = vxor.u32 2147483648, %v1444_v52  ;;  %v1573_v42 = vadd.s32 1, %v1569_v33  ;;  %v1643_v24 = vsel %vm1642_vm4, %v1641_v44, 0  ;;  %v3877_v56 = vand.u32 8388607, %v1785_v21 }
 0x1b7   : > { %v1645_v58 = vand.u32 31, %v1643_v24  ;;  %v3870_v53 = vshrl.u32 %v1643_v24, 5  ;;  %v3873_v15 = vshll.u32 %v1639_v12, 8  ;;  %v1789_v35 = vshrl.u32 %v1788_v59, 23 }
 0x1b8   : > { %v1446_v57 = vsel %vm1325_vm12, %v1445_v55, %v1444_v52  ;;  %v1574_v9 = vsel %vm1572_vm3, %v1573_v42, %v1569_v33  ;;  %vm1468_vm7 = vcmp.lt.s32.totalorder %v3844_v37, 2  ;;  %vm1466_vm8 = vweird.f32 %v3575_v27 }
 0x1b9   : > { %v3842_v2 = vsel %vm1324_vm2, %v3575_v27, %v1446_v57  ;;  %v1575_v5 = vadd.s32 %v1574_v9, %v1570_v29  ;;  %v3848_v50 = vsub.s32 32, %v1645_v58  ;;  %v1648_v40 = vshll.u32 %v2757_v14, %v1645_v58 }
 0x1ba   : > { %v1451_v34 = vmul.f32 %v3842_v2, %v3842_v2  ;;  %v1651_v47 = vshll.u32 %v2758_v16, %v1645_v58  ;;  %v1654_v54 = vshll.u32 %v2759_v18, %v1645_v58  ;;  %v1657_v0 = vshll.u32 %v2760_v20, %v1645_v58 }
 0x1bb   : > { %v1576_v19 = vadd.s32 536870912, %v1575_v5  ;;  %v1649_v61 = vshrl.u32 %v2758_v16, %v3848_v50  ;;  %v1652_v60 = vshrl.u32 %v2759_v18, %v3848_v50  ;;  %v1655_v41 = vshrl.u32 %v2760_v20, %v3848_v50 }
 0x1bc   : > { %v1452_v39 = vmul.f32 -0.001358992, %v1451_v34  ;;  %v1459_v48 = vmul.f32 -0.00019511016, %v1451_v34  ;;  %v1658_v32 = vshrl.u32 %v2761_v22, %v3848_v50  ;;  %v1660_v4 = vshll.u32 %v2761_v22, %v1645_v58 }
 0x1bd   : > { %v3865_v8 = vshrl.u32 %v1576_v19, 30  ;;  %v1650_v30 = vor.u32 %v1649_v61, %v1648_v40  ;;  %v1653_v45 = vor.u32 %v1652_v60, %v1651_v47  ;;  %v1661_v25 = vshrl.u32 %v2762_v28, %v3848_v50 }
 0x1be   : > { %v1453_v17 = vadd.f32 0.041655596, %v1452_v39  ;;  %v1460_v63 = vadd.f32 0.008332121, %v1459_v48  ;;  %v1659_v49 = vor.u32 %v1658_v32, %v1657_v0  ;;  %v1656_v44 = vor.u32 %v1655_v41, %v1654_v54 }
 0x1bf   : > { %v1578_v31 = vshll.u32 %v3865_v8, 30  ;;  %v1662_v36 = vor.u32 %v1661_v25, %v1660_v4  ;;  %vm1663_vm9 = vcmp.lt.s32.totalorder %v3870_v53, 1  ;;  %vm1665_vm10 = vcmp.lt.s32.totalorder %v3870_v53, 3 }
 0x1c0   : > { %v1454_v26 = vmul.f32 %v1453_v17, %v1451_v34  ;;  %v1461_v10 = vmul.f32 %v1460_v63, %v1451_v34  ;;  %vm1666_vm11 = vcmp.lt.s32.totalorder %v3870_v53, 4  ;;  %v1571_v42 = vadd.s32 %v3827_v6, %v3825_v13 }
 0x1c1   : > { %v3884_v52 = vsub.s32 %v1575_v5, %v1578_v31  ;;  %vm1664_vm13 = vcmp.lt.s32.totalorder %v3870_v53, 2  ;;  %v1672_v11 = vsel %vm1666_vm11, %v1659_v49, 920167782  ;;  %v2352_v24 = vadd.s32 4294967169, %v1789_v35 }
 0x1c2   : > { %v1455_v43 = vadd.f32 -0.4999988, %v1454_v26  ;;  %v1462_v23 = vadd.f32 -0.16666654, %v1461_v10  ;;  %v1673_v12 = vsel %vm1665_vm10, %v1656_v44, %v1672_v11  ;;  %v1675_v13 = vsel %vm1663_vm9, %v1653_v45, %v1656_v44 }
 0x1c3   : > { %vm1580_vm12 = vcmp.lt.s32.totalorder %v3884_v52, 0  ;;  %v1581_v29 = vsub.s32 0, %v3884_v52  ;;  %v1680_v6 = vand.u32 65535, %v3873_v15  ;;  %v1676_v59 = vsel %vm1666_vm11, %v1662_v36, 1326507024 }
 0x1c4   : > { %v1456_v33 = vmul.f32 %v1455_v43, %v1451_v34  ;;  %v1463_v55 = vmul.f32 %v1462_v23, %v1451_v34  ;;  %v1671_v34 = vsel %vm1663_vm9, %v1650_v30, %v1653_v45  ;;  %v1681_v39 = vshrl.u32 %v3873_v15, 16 }
 0x1c5   : > { %v1582_v9 = vsel %vm1580_vm12, %v1581_v29, %v3884_v52  ;;  %v1674_v19 = vsel %vm1664_vm13, %v1671_v34, %v1673_v12  ;;  %v1677_v54 = vsel %vm1665_vm10, %v1659_v49, %v1676_v59  ;;  %v1795_v61 = vadd.s32 1, %v2352_v24 }
 0x1c6   : > { %v1457_v57 = vadd.f32 1.0, %v1456_v33  ;;  %v1464_v58 = vadd.f32 1.0, %v1463_v55  ;;  %v1583_v5 = vclz %v1582_v9  ;;  %v1678_v0 = vsel %vm1664_vm13, %v1675_v13, %v1677_v54 }
 0x1c7   : > { %v1668_v17 = vsel %vm1666_vm11, %v1656_v44, 2102212464  ;;  %v1682_v63 = vand.u32 65535, %v1678_v0  ;;  %v1704_v32 = vand.u32 65535, %v1674_v19  ;;  %v1683_v10 = vshrl.u32 %v1678_v0, 16 }
 0x1c8   : > { %v1465_v40 = vmul.f32 %v1464_v58, %v3842_v2  ;;  %v1473_v47 = vxor.u32 2147483648, %v1457_v57  ;;  %v2347_v48 = vadd.s32 4294967294, %v1583_v5  ;;  %v1647_v2 = vshrl.u32 %v2757_v14, %v3848_v50 }
 0x1c9   : > { %v1705_v31 = vshrl.u32 %v1674_v19, 16  ;;  %v1601_v23 = vsub.s32 4, %v3865_v8  ;;  %v1669_v36 = vsel %vm1665_vm10, %v1653_v45, %v1668_v17  ;;  %v1684_v29 = vmul.u32 %v1682_v63, %v1680_v6 }
 0x1ca   : > { %v1470_v60 = vxor.u32 2147483648, %v1465_v40  ;;  %v1474_v41 = vsel %vm1472_vm5, %v1473_v47, %v1465_v40  ;;  %vm2348_vm14 = vcmp.lt.s32.totalorder %v2347_v48, 0  ;;  %v1667_v44 = vsel %vm1663_vm9, %v1647_v2, %v1650_v30 }
 0x1cb   : > { %v1586_v26 = vsel %vm2348_vm14, 0, %v2347_v48  ;;  %v1685_v37 = vmul.u32 %v1683_v10, %v1680_v6  ;;  %vm1479_vm15 = vcmp.lt.s32.totalorder %v3601_v7, 0  ;;  %v1706_v11 = vmul.u32 %v1704_v32, %v1680_v6 }
 0x1cc   : > { %v1471_v4 = vsel %vm1469_vm6, %v1457_v57, %v1470_v60  ;;  %v1587_v50 = vsub.s32 32, %v1586_v26  ;;  %v1588_v49 = vshll.u32 %v3884_v52, %v1586_v26  ;;  %v1591_v25 = vsub.s32 4294967266, %v1586_v26 }
 0x1cd   : > { %v1475_v35 = vsel %vm1468_vm7, %v1471_v4, %v1474_v41  ;;  %v1686_v52 = vmul.u32 %v1682_v63, %v1681_v39  ;;  %v1707_v24 = vmul.u32 %v1705_v31, %v1680_v6  ;;  %v1708_v27 = vmul.u32 %v1704_v32, %v1681_v39 }
 0x1ce   : > { %v1476_v43 = vsel %vm1466_vm8, nan, %v1475_v35  ;;  %v1589_v33 = vshrl.u32 %v1571_v42, %v1587_v50  ;;  %v1592_v55 = vadd.s32 127, %v1591_v25  ;;  %vm3937_vm0 = vcmp.le.f32.partialorder %v1477_v1, 0.7853982 }
 0x1cf   : > { %2098 = vst [vmem:[%s3381_s3 + $0x28] sm:$0xff] %v1476_v43  ;;  %v1687_v45 = vmul.u32 %v1683_v10, %v1681_v39  ;;  %v1688_v42 = vshll.u32 %v1685_v37, 16  ;;  %v3943_v9 = vsel %vm1664_vm13, %v1667_v44, %v1669_v36  ;;  %v1690_v34 = vshll.u32 %v1686_v52, 16 }
 0x1d0   : > { %v1590_v30 = vor.u32 %v1589_v33, %v1588_v49  ;;  %v1593_v58 = vshll.u32 %v1592_v55, 23  ;;  %v1709_v5 = vmul.u32 %v1705_v31, %v1681_v39  ;;  %v1710_v12 = vshll.u32 %v1707_v24, 16 }
 0x1d1   : > { %vm1692_vm1 = vc.u32 %v1684_v29, %v1688_v42  ;;  %v1694_v40 = vadd.s32 %v1688_v42, %v1684_v29  ;;  %v1689_v47 = vshrl.u32 %v1685_v37, 16  ;;  %v1691_v1 = vshrl.u32 %v1686_v52, 16 }
 0x1d2   : > { %v1594_v13 = vor.u32 4788187, %v1593_v58  ;;  %v1597_v6 = vcvt.s32.f32 %v1590_v30  ;;  %v1693_v59 = vsel %vm1692_vm1, 1, %v2763_v3  ;;  %v1712_v48 = vshll.u32 %v1708_v27, 16 }
 0x1d3   : > { %v1695_v54 = vadd.s32 %v1693_v59, %v1687_v45  ;;  %vm1696_vm2 = vc.u32 %v1694_v40, %v1690_v34  ;;  %vm1714_vm3 = vc.u32 %v1706_v11, %v1710_v12  ;;  %v1716_v41 = vadd.s32 %v1710_v12, %v1706_v11 }
 0x1d4   : > { %v1595_v19 = vand.u32 2147483647, %v1594_v13  ;;  %v1697_v53 = vsel %vm1696_vm2, 1, %v2763_v3  ;;  %v1715_v60 = vsel %vm1714_vm3, 1, %v2763_v3  ;;  %vm1796_vm4 = vcmp.gt.s32.totalorder %v1795_v61, 0 }
 0x1d5   : > { %v1699_v2 = vadd.s32 %v1697_v53, %v1695_v54  ;;  %v1717_v0 = vadd.s32 %v1715_v60, %v1709_v5  ;;  %v1797_v17 = vsel %vm1796_vm4, %v1795_v61, 0  ;;  %v1711_v63 = vshrl.u32 %v1707_v24, 16 }
 0x1d6   : > { %v1598_v39 = vmul.f32 %v1597_v6, %v1595_v19  ;;  %vm1718_vm5 = vc.u32 %v1716_v41, %v1712_v48  ;;  %v1793_v32 = vor.u32 8388608, %v3877_v56  ;;  %v1799_v4 = vand.u32 31, %v1797_v17 }
 0x1d7   : > { %v1602_v10 = vsel %vm1479_vm15, %v1601_v23, %v3865_v8  ;;  %v1700_v31 = vadd.s32 %v1699_v2, %v1689_v47  ;;  %v1719_v35 = vsel %vm1718_vm5, 1, %v2763_v3  ;;  %v1713_v50 = vshrl.u32 %v1708_v27, 16 }
 0x1d8   : > { %v1599_v26 = vxor.u32 2147483648, %v1598_v39  ;;  %v1721_v49 = vadd.s32 %v1719_v35, %v1717_v0  ;;  %v1724_v25 = vmul.u32 %v3873_v15, %v3943_v9  ;;  %v3955_v43 = vsub.s32 32, %v1799_v4 }
 0x1d9   : > { %v3959_v44 = vadd.s32 %v1700_v31, %v1691_v1  ;;  %v3961_v36 = vadd.s32 %v1716_v41, %v1712_v48  ;;  %v3963_v33 = vshrl.u32 %v1797_v17, 5  ;;  %v1802_v15 = vshll.u32 %v2757_v14, %v1799_v4 }
 0x1da   : > { %v1600_v61 = vsel %vm1479_vm15, %v1599_v26, %v1598_v39  ;;  %v1722_v23 = vadd.s32 %v1721_v49, %v1711_v63  ;;  %v1803_v55 = vshrl.u32 %v2758_v16, %v3955_v43  ;;  %v1805_v37 = vshll.u32 %v2758_v16, %v1799_v4 }
 0x1db   : > { %v3968_v8 = vsel %vm3937_vm0, %v3601_v7, %v1600_v61  ;;  %v1806_v52 = vshrl.u32 %v2759_v18, %v3955_v43  ;;  %v1808_v11 = vshll.u32 %v2759_v18, %v1799_v4  ;;  %v1809_v27 = vshrl.u32 %v2760_v20, %v3955_v43 }
 0x1dc   : > { %v1605_v29 = vmul.f32 %v3968_v8, %v3968_v8  ;;  %v1723_v24 = vadd.s32 %v1722_v23, %v1713_v50  ;;  %v1811_v30 = vshll.u32 %v2760_v20, %v1799_v4  ;;  %v1812_v58 = vshrl.u32 %v2761_v22, %v3955_v43 }
 0x1dd   : > { %vm1726_vm6 = vc.u32 %v3959_v44, %v3961_v36  ;;  %v1814_v9 = vshll.u32 %v2761_v22, %v1799_v4  ;;  %v1604_v34 = vsel %vm3937_vm0, 0, %v1602_v10  ;;  %v3990_v12 = vor.u32 %v1803_v55, %v1802_v15 }
 0x1de   : > { %v1606_v45 = vmul.f32 -0.001358992, %v1605_v29  ;;  %v1613_v42 = vmul.f32 -0.00019511016, %v1605_v29  ;;  %v1727_v5 = vadd.s32 1, %v1723_v24  ;;  %v1815_v13 = vshrl.u32 %v2762_v28, %v3955_v43 }
 0x1df   : > { %v3995_v47 = vor.u32 %v1806_v52, %v1805_v37  ;;  %v3997_v1 = vor.u32 %v1809_v27, %v1808_v11  ;;  %v1813_v59 = vor.u32 %v1812_v58, %v1811_v30  ;;  %vm1817_vm7 = vcmp.lt.s32.totalorder %v3963_v33, 1 }
 0x1e0   : > { %v1607_v6 = vadd.f32 0.041655596, %v1606_v45  ;;  %v1614_v40 = vadd.f32 0.008332121, %v1613_v42  ;;  %v1728_v57 = vsel %vm1726_vm6, %v1727_v5, %v1723_v24  ;;  %v1816_v48 = vor.u32 %v1815_v13, %v1814_v9 }
 0x1e1   : > { %v1729_v53 = vadd.s32 %v1728_v57, %v1724_v25  ;;  %vm1820_vm8 = vcmp.lt.s32.totalorder %v3963_v33, 4  ;;  %v4009_v60 = vand.u32 3, %v1604_v34  ;;  %vm1818_vm9 = vcmp.lt.s32.totalorder %v3963_v33, 2 }
 0x1e2   : > { %v1608_v19 = vmul.f32 %v1607_v6, %v1605_v29  ;;  %v1615_v54 = vmul.f32 %v1614_v40, %v1605_v29  ;;  %vm1819_vm10 = vcmp.lt.s32.totalorder %v3963_v33, 3  ;;  %v1825_v0 = vsel %vm1817_vm7, %v3990_v12, %v3995_v47 }
 0x1e3   : > { %v1730_v2 = vadd.s32 536870912, %v1729_v53  ;;  %v1826_v17 = vsel %vm1820_vm8, %v1813_v59, 920167782  ;;  %v1829_v63 = vsel %vm1817_vm7, %v3995_v47, %v3997_v1  ;;  %v1830_v4 = vsel %vm1820_vm8, %v1816_v48, 1326507024 }
 0x1e4   : > { %v1609_v41 = vadd.f32 -0.4999988, %v1608_v19  ;;  %v1616_v39 = vadd.f32 -0.16666654, %v1615_v54  ;;  %v4028_v26 = vshll.u32 %v1793_v32, 8  ;;  %v1827_v50 = vsel %vm1819_vm10, %v3997_v1, %v1826_v17 }
 0x1e5   : > { %v4034_v35 = vshrl.u32 %v1730_v2, 30  ;;  %v4041_v49 = vsel %vm1818_vm9, %v1825_v0, %v1827_v50  ;;  %v1831_v56 = vsel %vm1819_vm10, %v1813_v59, %v1830_v4  ;;  %vm1622_vm11 = vcmp.lt.s32.totalorder %v4009_v60, 2 }
 0x1e6   : > { %v1610_v10 = vmul.f32 %v1609_v41, %v1605_v29  ;;  %v1617_v31 = vmul.f32 %v1616_v39, %v1605_v29 }
 0x1e7   : > { %v1732_v61 = vshll.u32 %v4034_v35, 30 }
 0x1e8   : > { %v1611_v32 = vadd.f32 1.0, %v1610_v10  ;;  %v1618_v25 = vadd.f32 1.0, %v1617_v31 }
 0x1e9   : > { %2616 = shalt.err (!%p2613_p11)
}
 0x1ea   : > { %s2764_s10 = smov 256   ;;  %s2765_s8 = smov 512   ;;  %vm1626_vm12 = vcmp.eq.s32.totalorder %v4009_v60, 2  ;;  %v1832_v23 = vsel %vm1818_vm9, %v1829_v63, %v1831_v56  ;;  %v1834_v15 = vand.u32 65535, %v4028_v26  ;;  %v1835_v55 = vshrl.u32 %v4028_v26, 16 }
 0x1eb   : > { %s2766_s22 = smov 16   ;;  %v1619_v29 = vmul.f32 %v1618_v25, %v3968_v8  ;;  %v1627_v37 = vxor.u32 2147483648, %v1611_v32  ;;  %v1733_v52 = vsub.s32 %v1729_v53, %v1732_v61  ;;  %v1859_v11 = vshrl.u32 %v4041_v49, 16  ;;  %s4350_s28 = sld [smem:[#allocation22_spill]] }
 0x1ec   : > { %2379 = dma.vmem_to_hbm [thread:$0]  (%p2867_p8), %s4030_s7, 1280, %s4032_s30, %s2104_s0, %s2764_s10, %s2765_s8, %s2766_s22   ;;  %vm1623_vm13 = vcmp.eq.s32.totalorder %v4009_v60, 0  ;;  %v1836_v24 = vand.u32 65535, %v1832_v23  ;;  %v1837_v27 = vshrl.u32 %v1832_v23, 16  ;;  %v1858_v30 = vand.u32 65535, %v4041_v49 }
 0x1ed   : > { %v1624_v58 = vxor.u32 2147483648, %v1619_v29  ;;  %v1628_v45 = vsel %vm1626_vm12, %v1627_v37, %v1619_v29  ;;  %vm1734_vm14 = vcmp.lt.s32.totalorder %v1733_v52, 0  ;;  %v1735_v42 = vsub.s32 0, %v1733_v52  ;;  %s4349_s7 = sshll.u32 %s3999_s29, 3  ;;  %s2144_s18 = sshll.u32 %s3381_s3, 4  ;;  %s2145_s18 = int_to_ptr.vmem [resolvable:$true] %s2144_s18 }
 0x1ee   : > { %vm1620_vm15 = vweird.f32 %v3601_v7  ;;  %v1838_v9 = vmul.u32 %v1836_v24, %v1834_v15  ;;  %v1839_v34 = vmul.u32 %v1837_v27, %v1834_v15  ;;  %v1840_v5 = vmul.u32 %v1836_v24, %v1835_v55  ;;  %s2109_s29 = scalar_lea.sflag [#allocation11], %s2952_s27 }
 0x1ef   : > { %v1625_v8 = vsel %vm1623_vm13, %v1611_v32, %v1624_v58  ;;  %v1736_v13 = vsel %vm1734_vm14, %v1735_v42, %v1733_v52  ;;  %v1841_v6 = vmul.u32 %v1837_v27, %v1835_v55  ;;  %v1861_v40 = vmul.u32 %v1859_v11, %v1834_v15 }
 0x1f0   : > { %v1629_v57 = vsel %vm1622_vm11, %v1625_v8, %v1628_v45  ;;  %v1737_v59 = vclz %v1736_v13  ;;  %v1842_v48 = vshll.u32 %v1839_v34, 16  ;;  %v1862_v19 = vmul.u32 %v1858_v30, %v1835_v55 }
 0x1f1   : > { %v1630_v54 = vsel %vm1620_vm15, nan, %v1629_v57  ;;  %v1844_v53 = vshll.u32 %v1840_v5, 16  ;;  %v1860_v41 = vmul.u32 %v1858_v30, %v1834_v15  ;;  %v1864_v2 = vshll.u32 %v1861_v40, 16  ;;  %s2143_s15 = scalar_lea.hbm %s4350_s28, %s4349_s7  ;;  %s2637_s30 = scalar_lea.hbm %s4350_s28, 800 }
 0x1f2   : > { %v2350_v39 = vadd.s32 4294967294, %v1737_v59  ;;  %vm1846_vm0 = vc.u32 %v1838_v9, %v1842_v48  ;;  %v1848_v7 = vadd.s32 %v1842_v48, %v1838_v9  ;;  %2099 = vst [vmem:[%s3381_s3 + $0x30] sm:$0xff] %v1630_v54  ;;  %v1725_v0 = vadd.s32 %v3961_v36, %v3959_v44  ;;  %s2146_s26 = sshll.u32 %s2143_s15, 4  ;;  %s2147_s26 = int_to_ptr.hbm [resolvable:$true] %s2146_s26 }
 0x1f3   : > { %v1801_v17 = vshrl.u32 %v2757_v14, %v3955_v43  ;;  %v1822_v60 = vsel %vm1820_vm8, %v3997_v1, 2102212464  ;;  %v1847_v63 = vsel %vm1846_vm0, 1, %v2763_v3  ;;  %v1863_v10 = vmul.u32 %v1859_v11, %v1835_v55  ;;  %s2631_s9 = sshra.s32 %s2147_s26, 4  ;;  %s2632_s9 = int_to_ptr.hbm [resolvable:$true] %s2631_s9 }
 0x1f4   : > { %vm2351_vm1 = vcmp.lt.s32.totalorder %v2350_v39, 0  ;;  %v1849_v4 = vadd.s32 %v1847_v63, %v1841_v6  ;;  %v1866_v31 = vshll.u32 %v1862_v19, 16  ;;  %vm1850_vm2 = vc.u32 %v1848_v7, %v1844_v53  ;;  %s2633_s5 = scalar_lea.hbm %s2632_s9, 80  ;;  %p2638_p2 = scmp.lt.s32.totalorder %s2632_s9, %s4350_s28 }
 0x1f5   : > { %v1740_v50 = vsel %vm2351_vm1, 0, %v2350_v39  ;;  %vm1868_vm3 = vc.u32 %v1860_v41, %v1864_v2  ;;  %v1870_v49 = vadd.s32 %v1864_v2, %v1860_v41  ;;  %v1843_v36 = vshrl.u32 %v1839_v34, 16  ;;  %p2634_p0 = scmp.ne.s32.totalorder %s2632_s9, %s2633_s5  ;;  %p2639_p5 = scmp.lt.s32.totalorder %s2637_s30, %s2633_s5 }
 0x1f6   : > { %v1741_v56 = vsub.s32 32, %v1740_v50  ;;  %v1742_v32 = vshll.u32 %v1733_v52, %v1740_v50  ;;  %v1745_v44 = vsub.s32 4294967266, %v1740_v50  ;;  %v1821_v43 = vsel %vm1817_vm7, %v1801_v17, %v3990_v12 }
 0x1f7   : > { %v1845_v25 = vshrl.u32 %v1840_v5, 16  ;;  %v1851_v1 = vsel %vm1850_vm2, 1, %v2763_v3  ;;  %v1869_v61 = vsel %vm1868_vm3, 1, %v2763_v3  ;;  %v1823_v37 = vsel %vm1819_vm10, %v3995_v47, %v1822_v60  ;;  %p2635_p4 = pnand %p2634_p0, %p2867_p8  ;;  %p2640_p1 = por %p2639_p5, %p2638_p2 }
 0x1f8   : > { %v1743_v23 = vshrl.u32 %v1725_v0, %v1741_v56  ;;  %v1746_v15 = vadd.s32 127, %v1745_v44  ;;  %v1853_v55 = vadd.s32 %v1851_v1, %v1849_v4  ;;  %v1871_v29 = vadd.s32 %v1869_v61, %v1863_v10 }
 0x1f9   : > { %v1865_v52 = vshrl.u32 %v1861_v40, 16  ;;  %vm1872_vm4 = vc.u32 %v1870_v49, %v1866_v31  ;;  %v1942_v11 = vand.u32 2139095040, %v3087_v46  ;;  %v1867_v58 = vshrl.u32 %v1862_v19, 16  ;;  %p2636_p6 = pneg %p2635_p4 }
 0x1fa   : > { %v1744_v24 = vor.u32 %v1743_v23, %v1742_v32  ;;  %v1747_v27 = vshll.u32 %v1746_v15, 23  ;;  %v1854_v12 = vadd.s32 %v1853_v55, %v1843_v36  ;;  %v1873_v30 = vsel %vm1872_vm4, 1, %v2763_v3 }
 0x1fb   : > { %v1875_v45 = vadd.s32 %v1873_v30, %v1871_v29  ;;  %v1943_v42 = vshrl.u32 %v1942_v11, 23  ;;  %v4097_v8 = vadd.s32 %v1870_v49, %v1866_v31  ;;  %v1755_v47 = vsub.s32 4, %v4034_v35  ;;  %p2641_p3 = pnand %p2640_p1, %p2636_p6 }
 0x1fc   : > { %v1748_v9 = vor.u32 4788187, %v1747_v27  ;;  %v1751_v34 = vcvt.s32.f32 %v1744_v24  ;;  %v4095_v5 = vadd.s32 %v1854_v12, %v1845_v25  ;;  %v1824_v13 = vsel %vm1818_vm9, %v1821_v43, %v1823_v37 }
 0x1fd   : > { %v1876_v6 = vadd.s32 %v1875_v45, %v1865_v52  ;;  %v2355_v40 = vadd.s32 4294967169, %v1943_v42  ;;  %vm1633_vm5 = vcmp.lt.s32.totalorder %v3814_v51, 0  ;;  %v1878_v54 = vmul.u32 %v4028_v26, %v1824_v13 }
 0x1fe   : > { %v1749_v57 = vand.u32 2147483647, %v1748_v9  ;;  %vm1880_vm6 = vc.u32 %v4095_v5, %v4097_v8  ;;  %v1756_v53 = vsel %vm1633_vm5, %v1755_v47, %v4034_v35  ;;  %v1939_v39 = vand.u32 2147483647, %v3087_v46 }
 0x1ff   : > { %v1877_v59 = vadd.s32 %v1876_v6, %v1867_v58  ;;  %v1949_v48 = vadd.s32 1, %v2355_v40  ;;  %vm4110_vm8 = vcmp.le.f32.partialorder %v1631_v62, 0.7853982  ;;  %vm1774_vm13 = vweird.f32 %v3814_v51 }
 0x200   : > { %v1752_v19 = vmul.f32 %v1751_v34, %v1749_v57  ;;  %v1758_v60 = vsel %vm4110_vm8, 0, %v1756_v53  ;;  %v1946_v4 = vand.u32 8388607, %v1939_v39  ;;  %vm1787_vm3 = vcmp.lt.s32.totalorder %v3851_v38, 0 }
 0x201   : > { %v1881_v41 = vadd.s32 1, %v1877_v59  ;;  %vm1950_vm7 = vcmp.gt.s32.totalorder %v1949_v48, 0  ;;  %v4137_v15 = vand.u32 3, %v1758_v60  ;;  %vm4195_vm4 = vcmp.le.f32.partialorder %v1785_v21, 0.7853982 }
 0x202   : > { %v1753_v7 = vxor.u32 2147483648, %v1752_v19  ;;  %v1951_v2 = vsel %vm1950_vm7, %v1949_v48, 0  ;;  %v1947_v52 = vor.u32 8388608, %v1946_v4 }
 0x203   : > { %v1882_v0 = vsel %vm1880_vm6, %v1881_v41, %v1877_v59  ;;  %v1953_v17 = vand.u32 31, %v1951_v2  ;;  %v4139_v55 = vshrl.u32 %v1951_v2, 5  ;;  %vm1776_vm14 = vcmp.lt.s32.totalorder %v4137_v15, 2 }
 0x204   : > { %v1754_v26 = vsel %vm1633_vm5, %v1753_v7, %v1752_v19  ;;  %v1883_v63 = vadd.s32 %v1882_v0, %v1878_v54  ;;  %v4158_v40 = vshll.u32 %v1947_v52, 8  ;;  %vm1777_vm0 = vcmp.eq.s32.totalorder %v4137_v15, 0 }
 0x205   : > { %v1757_v35 = vsel %vm4110_vm8, %v3814_v51, %v1754_v26  ;;  %v4121_v62 = vsub.s32 32, %v1953_v17  ;;  %v1956_v10 = vshll.u32 %v2757_v14, %v1953_v17  ;;  %v1959_v49 = vshll.u32 %v2758_v16, %v1953_v17 }
 0x206   : > { %v1759_v31 = vmul.f32 %v1757_v35, %v1757_v35  ;;  %v1884_v50 = vadd.s32 536870912, %v1883_v63  ;;  %v1962_v56 = vshll.u32 %v2759_v18, %v1953_v17  ;;  %v1965_v43 = vshll.u32 %v2760_v20, %v1953_v17 }
 0x207   : > { %v1957_v32 = vshrl.u32 %v2758_v16, %v4121_v62  ;;  %v1960_v44 = vshrl.u32 %v2759_v18, %v4121_v62  ;;  %v1963_v36 = vshrl.u32 %v2760_v20, %v4121_v62  ;;  %v1966_v23 = vshrl.u32 %v2761_v22, %v4121_v62 }
 0x208   : > { %v1760_v25 = vmul.f32 -0.001358992, %v1759_v31  ;;  %v1767_v1 = vmul.f32 -0.00019511016, %v1759_v31  ;;  %v4133_v61 = vshrl.u32 %v1884_v50, 30  ;;  %v1968_v16 = vshll.u32 %v2761_v22, %v1953_v17 }
 0x209   : > { %v4143_v11 = vor.u32 %v1957_v32, %v1956_v10  ;;  %v4145_v20 = vor.u32 %v1960_v44, %v1959_v49  ;;  %v1967_v24 = vor.u32 %v1966_v23, %v1965_v43  ;;  %v1969_v27 = vshrl.u32 %v2762_v28, %v4121_v62 }
 0x20a   : > { %v1761_v29 = vadd.f32 0.041655596, %v1760_v25  ;;  %v1768_v18 = vadd.f32 0.008332121, %v1767_v1  ;;  %v1886_v37 = vshll.u32 %v4133_v61, 30  ;;  %v4149_v45 = vor.u32 %v1963_v36, %v1962_v56 }
 0x20b   : > { %v1970_v42 = vor.u32 %v1969_v27, %v1968_v16  ;;  %vm1971_vm9 = vcmp.lt.s32.totalorder %v4139_v55, 1  ;;  %vm1973_vm10 = vcmp.lt.s32.totalorder %v4139_v55, 3  ;;  %vm1974_vm11 = vcmp.lt.s32.totalorder %v4139_v55, 4 }
 0x20c   : > { %v1762_v12 = vmul.f32 %v1761_v29, %v1759_v31  ;;  %v1769_v30 = vmul.f32 %v1768_v18, %v1759_v31  ;;  %v1887_v58 = vsub.s32 %v1883_v63, %v1886_v37  ;;  %v1980_v28 = vsel %vm1974_vm11, %v1967_v24, 920167782 }
 0x20d   : > { %vm1972_vm15 = vcmp.lt.s32.totalorder %v4139_v55, 2  ;;  %v1979_v59 = vsel %vm1971_vm9, %v4143_v11, %v4145_v20  ;;  %v1981_v48 = vsel %vm1973_vm10, %v4149_v45, %v1980_v28  ;;  %v1983_v53 = vsel %vm1971_vm9, %v4145_v20, %v4149_v45 }
 0x20e   : > { %v1763_v22 = vadd.f32 -0.4999988, %v1762_v12  ;;  %v1770_v9 = vadd.f32 -0.16666654, %v1769_v30  ;;  %vm1888_vm12 = vcmp.lt.s32.totalorder %v1887_v58, 0  ;;  %v1889_v34 = vsub.s32 0, %v1887_v58 }
 0x20f   : > { %v1984_v41 = vsel %vm1974_vm11, %v1970_v42, 1326507024  ;;  %vm1780_vm1 = vcmp.eq.s32.totalorder %v4137_v15, 2  ;;  %v1879_v17 = vadd.s32 %v4097_v8, %v4095_v5  ;;  %v1982_v26 = vsel %vm1972_vm15, %v1979_v59, %v1981_v48 }
 0x210   : > { %v1764_v47 = vmul.f32 %v1763_v22, %v1759_v31  ;;  %v1771_v13 = vmul.f32 %v1770_v9, %v1759_v31  ;;  %v1890_v6 = vsel %vm1888_vm12, %v1889_v34, %v1887_v58  ;;  %v1985_v7 = vsel %vm1973_vm10, %v1967_v24, %v1984_v41 }
 0x211   : > { %v1891_v57 = vclz %v1890_v6  ;;  %v1986_v60 = vsel %vm1972_vm15, %v1983_v53, %v1985_v7  ;;  %v1988_v63 = vand.u32 65535, %v4158_v40  ;;  %v1989_v4 = vshrl.u32 %v4158_v40, 16 }
 0x212   : > { %v1765_v19 = vadd.f32 1.0, %v1764_v47  ;;  %v1772_v54 = vadd.f32 1.0, %v1771_v13  ;;  %v1990_v49 = vand.u32 65535, %v1986_v60  ;;  %v2013_v44 = vshrl.u32 %v1982_v26, 16 }
 0x213   : > { %v2353_v33 = vadd.s32 4294967294, %v1891_v57  ;;  %v1991_v8 = vshrl.u32 %v1986_v60, 16  ;;  %v2012_v36 = vand.u32 65535, %v1982_v26  ;;  %v1955_v15 = vshrl.u32 %v2757_v14, %v4121_v62 }
 0x214   : > { %v1773_v2 = vmul.f32 %v1772_v54, %v1757_v35  ;;  %v1781_v0 = vxor.u32 2147483648, %v1765_v19  ;;  %v1992_v16 = vmul.u32 %v1990_v49, %v1988_v63  ;;  %v1994_v18 = vmul.u32 %v1990_v49, %v1989_v4 }
 0x215   : > { %vm2354_vm2 = vcmp.lt.s32.totalorder %v2353_v33, 0  ;;  %v1993_v29 = vmul.u32 %v1991_v8, %v1988_v63  ;;  %v2015_v27 = vmul.u32 %v2013_v44, %v1988_v63  ;;  %v1995_v51 = vmul.u32 %v1991_v8, %v1989_v4 }
 0x216   : > { %v1778_v10 = vxor.u32 2147483648, %v1773_v2  ;;  %v1782_v31 = vsel %vm1780_vm1, %v1781_v0, %v1773_v2  ;;  %v1894_v50 = vsel %vm2354_vm2, 0, %v2353_v33  ;;  %v1998_v30 = vshll.u32 %v1994_v18, 16 }
 0x217   : > { %v1895_v35 = vsub.s32 32, %v1894_v50  ;;  %v1896_v56 = vshll.u32 %v1887_v58, %v1894_v50  ;;  %v1899_v32 = vsub.s32 4294967266, %v1894_v50  ;;  %v1996_v12 = vshll.u32 %v1993_v29, 16 }
 0x218   : > { %v1779_v5 = vsel %vm1777_vm0, %v1765_v19, %v1778_v10  ;;  %v2014_v58 = vmul.u32 %v2012_v36, %v1988_v63  ;;  %v1976_v21 = vsel %vm1974_vm11, %v4149_v45, 2102212464  ;;  %v2016_v9 = vmul.u32 %v2012_v36, %v1989_v4 }
 0x219   : > { %v1783_v43 = vsel %vm1776_vm14, %v1779_v5, %v1782_v31  ;;  %v1897_v25 = vshrl.u32 %v1879_v17, %v1895_v35  ;;  %v1900_v1 = vadd.s32 127, %v1899_v32  ;;  %vm2000_vm5 = vc.u32 %v1992_v16, %v1996_v12 }
 0x21a   : > { %v1784_v23 = vsel %vm1774_vm13, nan, %v1783_v43  ;;  %v2002_v34 = vadd.s32 %v1996_v12, %v1992_v16  ;;  %v2017_v28 = vmul.u32 %v2013_v44, %v1989_v4  ;;  %v2018_v47 = vshll.u32 %v2015_v27, 16 }
 0x21b   : > { %v1898_v52 = vor.u32 %v1897_v25, %v1896_v56  ;;  %v1901_v24 = vshll.u32 %v1900_v1, 23  ;;  %2100 = vst [vmem:[%s3381_s3 + $0x38] sm:$0xff] %v1784_v23  ;;  %v1997_v6 = vshrl.u32 %v1993_v29, 16  ;;  %v2001_v14 = vsel %vm2000_vm5, 1, %v2763_v3 }
 0x21c   : > { %v2020_v62 = vshll.u32 %v2016_v9, 16  ;;  %v2003_v57 = vadd.s32 %v2001_v14, %v1995_v51  ;;  %vm2004_vm6 = vc.u32 %v2002_v34, %v1998_v30  ;;  %vm2022_vm7 = vc.u32 %v2014_v58, %v2018_v47 }
 0x21d   : > { %v1902_v42 = vor.u32 4788187, %v1901_v24  ;;  %v1905_v22 = vcvt.s32.f32 %v1898_v52  ;;  %v2024_v59 = vadd.s32 %v2018_v47, %v2014_v58  ;;  %v1999_v19 = vshrl.u32 %v1994_v18, 16 }
 0x21e   : > { %v2005_v54 = vsel %vm2004_vm6, 1, %v2763_v3  ;;  %v2023_v45 = vsel %vm2022_vm7, 1, %v2763_v3  ;;  %v2019_v41 = vshrl.u32 %v2015_v27, 16  ;;  %v1975_v2 = vsel %vm1971_vm9, %v1955_v15, %v4143_v11 }
 0x21f   : > { %v1903_v13 = vand.u32 2147483647, %v1902_v42  ;;  %v2007_v53 = vadd.s32 %v2005_v54, %v2003_v57  ;;  %v2025_v33 = vadd.s32 %v2023_v45, %v2017_v28  ;;  %vm2026_vm8 = vc.u32 %v2024_v59, %v2020_v62 }
 0x220   : > { %v1977_v0 = vsel %vm1973_vm10, %v4145_v20, %v1976_v21  ;;  %v2027_v17 = vsel %vm2026_vm8, 1, %v2763_v3  ;;  %v2021_v60 = vshrl.u32 %v2016_v9, 16  ;;  %v1909_v10 = vsub.s32 4, %v4133_v61 }
 0x221   : > { %v1906_v48 = vmul.f32 %v1905_v22, %v1903_v13  ;;  %v2008_v26 = vadd.s32 %v2007_v53, %v1997_v6  ;;  %v2029_v63 = vadd.s32 %v2027_v17, %v2025_v33  ;;  %v2028_v31 = vadd.s32 %v2024_v59, %v2020_v62 }
 0x222   : > { %v1978_v11 = vsel %vm1972_vm15, %v1975_v2, %v1977_v0  ;;  %v1910_v5 = vsel %vm1787_vm3, %v1909_v10, %v4133_v61  ;;  %vm1928_vm14 = vweird.f32 %v3851_v38  ;;  %vm1941_vm0 = vcmp.lt.s32.totalorder %v3087_v46, 0 }
 0x223   : > { %v1907_v7 = vxor.u32 2147483648, %v1906_v48  ;;  %v2009_v49 = vadd.s32 %v2008_v26, %v1999_v19  ;;  %v2030_v20 = vadd.s32 %v2029_v63, %v2019_v41  ;;  %v2032_v44 = vmul.u32 %v4158_v40, %v1978_v11 }
 0x224   : > { %v1912_v55 = vsel %vm4195_vm4, 0, %v1910_v5  ;;  %vm4234_vm1 = vcmp.le.f32.partialorder %v1939_v39, 0.7853982  ;;  %vm2082_vm5 = vweird.f32 %v3087_v46 }
 0x225   : > { %v1908_v4 = vsel %vm1787_vm3, %v1907_v7, %v1906_v48  ;;  %v2031_v3 = vadd.s32 %v2030_v20, %v2021_v60  ;;  %vm2034_vm9 = vc.u32 %v2009_v49, %v2028_v31  ;;  %v1929_v24 = vand.u32 3, %v1912_v55 }
 0x226   : > { %v1911_v50 = vsel %vm4195_vm4, %v3851_v38, %v1908_v4  ;;  %v2033_v14 = vadd.s32 %v2028_v31, %v2009_v49 }
 0x227   : > { %v1913_v35 = vmul.f32 %v1911_v50, %v1911_v50  ;;  %v2035_v8 = vadd.s32 1, %v2031_v3  ;;  %vm1934_vm10 = vcmp.eq.s32.totalorder %v1929_v24, 2  ;;  %vm1930_vm11 = vcmp.lt.s32.totalorder %v1929_v24, 2 }
 0x228   : > { %vm1931_vm12 = vcmp.eq.s32.totalorder %v1929_v24, 0 }
 0x229   : > { %v1914_v56 = vmul.f32 -0.001358992, %v1913_v35  ;;  %v1921_v32 = vmul.f32 -0.00019511016, %v1913_v35  ;;  %v2036_v25 = vsel %vm2034_vm9, %v2035_v8, %v2031_v3 }
 0x22a   : > { %v2037_v16 = vadd.s32 %v2036_v25, %v2032_v44 }
 0x22b   : > { %v1915_v36 = vadd.f32 0.041655596, %v1914_v56  ;;  %v1922_v43 = vadd.f32 0.008332121, %v1921_v32 }
 0x22c   : > { %v2038_v52 = vadd.s32 536870912, %v2037_v16 }
 0x22d   : > { %v1916_v1 = vmul.f32 %v1915_v36, %v1913_v35  ;;  %v1923_v23 = vmul.f32 %v1922_v43, %v1913_v35 }
 0x22e   : > { %v2039_v27 = vshrl.u32 %v2038_v52, 30 }
 0x22f   : > { %v1917_v29 = vadd.f32 -0.4999988, %v1916_v1  ;;  %v1924_v18 = vadd.f32 -0.16666654, %v1923_v23 }
 0x230   : > { %v2040_v61 = vshll.u32 %v2039_v27, 30  ;;  %v2063_v26 = vsub.s32 4, %v2039_v27 }
 0x231   : > { %v1918_v40 = vmul.f32 %v1917_v29, %v1913_v35  ;;  %v1925_v15 = vmul.f32 %v1924_v18, %v1913_v35 }
 0x232   : > { %v2041_v42 = vsub.s32 %v2037_v16, %v2040_v61  ;;  %v2064_v31 = vsel %vm1941_vm0, %v2063_v26, %v2039_v27 }
 0x233   : > { %v1919_v51 = vadd.f32 1.0, %v1918_v40  ;;  %v1926_v12 = vadd.f32 1.0, %v1925_v15  ;;  %v2066_v39 = vsel %vm4234_vm1, 0, %v2064_v31 }
 0x234   : > { %vm2042_vm13 = vcmp.lt.s32.totalorder %v2041_v42, 0  ;;  %v2043_v21 = vsub.s32 0, %v2041_v42  ;;  %v2083_v56 = vand.u32 3, %v2066_v39 }
 0x235   : > { %v1927_v30 = vmul.f32 %v1926_v12, %v1911_v50  ;;  %v1935_v58 = vxor.u32 2147483648, %v1919_v51 }
 0x236   : > { %v2044_v34 = vsel %vm2042_vm13, %v2043_v21, %v2041_v42  ;;  %vm2088_vm2 = vcmp.eq.s32.totalorder %v2083_v56, 2  ;;  %vm2085_vm3 = vcmp.eq.s32.totalorder %v2083_v56, 0  ;;  %vm2084_vm4 = vcmp.lt.s32.totalorder %v2083_v56, 2 }
 0x237   : > { %v1932_v37 = vxor.u32 2147483648, %v1927_v30  ;;  %v1936_v22 = vsel %vm1934_vm10, %v1935_v58, %v1927_v30  ;;  %v2045_v47 = vclz %v2044_v34 }
 0x239   : > { %v1933_v9 = vsel %vm1931_vm12, %v1919_v51, %v1932_v37  ;;  %v2356_v6 = vadd.s32 4294967294, %v2045_v47 }
 0x23a   : > { %v1937_v28 = vsel %vm1930_vm11, %v1933_v9, %v1936_v22 }
 0x23b   : > { %v1938_v13 = vsel %vm1928_vm14, nan, %v1937_v28  ;;  %vm2357_vm15 = vcmp.lt.s32.totalorder %v2356_v6, 0 }
 0x23c   : > { %2101 = vst [vmem:[%s3381_s3 + $0x40] sm:$0xff] %v1938_v13  ;;  %v2048_v62 = vsel %vm2357_vm15, 0, %v2356_v6 }
 0x23d   : > { %v2049_v57 = vsub.s32 32, %v2048_v62  ;;  %v2050_v59 = vshll.u32 %v2041_v42, %v2048_v62  ;;  %v2053_v48 = vsub.s32 4294967266, %v2048_v62 }
 0x23f   : > { %v2051_v19 = vshrl.u32 %v2033_v14, %v2049_v57  ;;  %v2054_v54 = vadd.s32 127, %v2053_v48 }
 0x241   : > { %v2052_v45 = vor.u32 %v2051_v19, %v2050_v59  ;;  %v2055_v53 = vshll.u32 %v2054_v54, 23 }
 0x243   : > { %v2056_v41 = vor.u32 4788187, %v2055_v53  ;;  %v2059_v33 = vcvt.s32.f32 %v2052_v45 }
 0x245   : > { %v2057_v38 = vand.u32 2147483647, %v2056_v41 }
 0x247   : > { %v2060_v7 = vmul.f32 %v2059_v33, %v2057_v38 }
 0x249   : > { %v2061_v0 = vxor.u32 2147483648, %v2060_v7 }
 0x24b   : > { %v2062_v17 = vsel %vm1941_vm0, %v2061_v0, %v2060_v7 }
 0x24c   : > { %v2065_v60 = vsel %vm4234_vm1, %v3087_v46, %v2062_v17 }
 0x24d   : > { %v2067_v63 = vmul.f32 %v2065_v60, %v2065_v60 }
 0x24f   : > { %v2068_v4 = vmul.f32 -0.001358992, %v2067_v63  ;;  %v2075_v10 = vmul.f32 -0.00019511016, %v2067_v63 }
 0x251   : > { %v2069_v50 = vadd.f32 0.041655596, %v2068_v4  ;;  %v2076_v11 = vadd.f32 0.008332121, %v2075_v10 }
 0x253   : > { %v2070_v49 = vmul.f32 %v2069_v50, %v2067_v63  ;;  %v2077_v20 = vmul.f32 %v2076_v11, %v2067_v63 }
 0x255   : > { %v2071_v35 = vadd.f32 -0.4999988, %v2070_v49  ;;  %v2078_v3 = vadd.f32 -0.16666654, %v2077_v20 }
 0x257   : > { %v2072_v32 = vmul.f32 %v2071_v35, %v2067_v63  ;;  %v2079_v44 = vmul.f32 %v2078_v3, %v2067_v63 }
 0x259   : > { %v2073_v5 = vadd.f32 1.0, %v2072_v32  ;;  %v2080_v8 = vadd.f32 1.0, %v2079_v44 }
 0x25b   : > { %v2081_v36 = vmul.f32 %v2080_v8, %v2065_v60  ;;  %v2089_v43 = vxor.u32 2147483648, %v2073_v5 }
 0x25d   : > { %v2086_v25 = vxor.u32 2147483648, %v2081_v36  ;;  %v2090_v55 = vsel %vm2088_vm2, %v2089_v43, %v2081_v36 }
 0x25f   : > { %v2087_v1 = vsel %vm2085_vm3, %v2073_v5, %v2086_v25 }
 0x260   : > { %v2091_v23 = vsel %vm2084_vm4, %v2087_v1, %v2090_v55 }
 0x261   : > { %v2092_v16 = vsel %vm2082_vm5, nan, %v2091_v23 }
 0x262   : > { %2102 = vst [vmem:[%s3381_s3 + $0x48] sm:$0xff] %v2092_v16 }
 0x263   : > { %2644 = shalt.err (!%p2641_p3)
}
 0x264   : > { %2380 = dma.vmem_to_hbm [thread:$0]  (%p2867_p8), %s2145_s18, 1280, %s2147_s26, %s2109_s29, %s2764_s10, %s2765_s8, %s2766_s22  }
 0x265 PF: > { %s4351_s27 = sld [smem:[#allocation17_spill]]  ;;  %p2404_p7 = scmp.ge.s32.totalorder %s2751_s25, 2 }
 0x267   : > { %p2395_p12 = pnand %p2404_p7, %p2871_p9 }
 0x269   : > { %p2396_p13 = pneg %p2395_p12 }
 0x26b   : > { %s2161_s21 = sand.u32 1, %s4351_s27  }
 0x26c   : > { %s2162_s9 = scalar_lea.sflag [#allocation4], %s2161_s21 }
 0x26d   : > { %2702 = dma.done.wait (%p2396_p13), %s2162_s9, 1280  }
 0x26e   : > { %2704 = vsyncadd (%p2396_p13), %s2162_s9, 4294966016  ;;  %s2172_s5 = scalar_lea.sflag [#allocation11], %s2161_s21 }
 0x26f   : > { %2706 = dma.done.wait (%p2396_p13), %s2172_s5, 1280  }
 0x270   : > { %2708 = vsyncadd (%p2396_p13), %s2172_s5, 4294966016  ;;  %s28_s25 = sadd.s32 1, %s2751_s25   ;;  %s4353_s15 = smov %s2715_s16 }
 0x271   : > { %p25_p10 = scmp.ge.s32.totalorder %s28_s25, 12   ;;  %s4354_s16 = smov %s2719_s17 }
 0x272   : > { %s4355_s17 = smov %s2916_s4  ;;  %s4356_s18 = smov %s2727_s19 }
 0x273   : > { %s4357_s19 = smov %s2731_s20  ;;  %s4358_s20 = smov %s2934_s6 }
 0x274   : > { %s4359_s21 = smov %s2743_s23  ;;  %s4360_s22 = smov %s2747_s24 }
 0x275   : > { %s4361_s23 = smov %s4364_s12  ;;  %s4362_s24 = smov %s4368_s14 }
 0x276   :  { %27 = sbr.rel (!%p25_p10) target bundleno = 18 (0x12), region = 112 }
 0x27b   :  { %2178 = vsyncpa [#allocation3], 1 }
 0x27c   :  { %2180 = vsyncpa [#allocation3 + $0x1], 1 }
 0x27d   :  { %2181 = vsyncpa [#allocation8], 1 }
 0x27e   :  { %2183 = vsyncpa [#allocation8 + $0x1], 1 }
 0x27f   :  { %2184 = vsyncpa [#allocation4], 1 }
 0x280   :  { %2186 = vsyncpa [#allocation4 + $0x1], 1 }
 0x281   :  { %2187 = vsyncpa [#allocation11], 1 }
 0x282   :  { %2189 = vsyncpa [#allocation11 + $0x1], 1 }
 0x283   :  { %2190 = vsyncpa [#allocation5], 1 }
 0x284   :  { %2192 = vsyncpa [#allocation5 + $0x1], 1 }

</bundles_post_ra>
